<compile_context>
chip_gen: v7x
topology: tpu7x:2x2x1
jax: 0.10.0
libtpu: 0.0.40
codegen_flags: <defaults>
</compile_context>

<pallas_src>
import functools

import jax
import jax.numpy as jnp
from jax.experimental import pallas as pl
from jax.experimental.pallas import tpu as pltpu


# ---------------------------------------------------------------------------
# Fused kernel: one grid step = full Conv+ReLU stack for B images.
# ---------------------------------------------------------------------------
def _conv_block_kernel(x_ref, w_ref, b_ref, mask_ref, o_ref, act_ref, *,
                       n_total_layers, KH, KW, Wp, L, off, BC):
    """
    x_ref    : (BC, L)            bf16  B images x Cmax channels, rows right-padded to Wp
    w_ref    : (NL, KH*KW, BC, BC) bf16 per-layer, per-tap block-diagonal weights
    b_ref    : (NL, BC, 1)        f32   bias, channel-padded and tiled over the batch
    mask_ref : (1, L)             f32   1.0 on real output columns, 0.0 on halo columns
    o_ref    : (1, BC, L)         f32   lane-dense output slab (halo cols stripped by wrapper)
    act_ref  : VMEM (BC, BUF)     bf16  zero-halo activation buffer between layers
    """
    # In-kernel 'same' padding: zero the halo, drop the (already right-padded)
    # input into the interior.  No HBM halo materialization.
    act_ref[...] = jnp.zeros_like(act_ref)
    act_ref[:, off:off + L] = x_ref[...]

    # Hoist the (1, L) -> (BC, L) halo-mask broadcast out of the layer loop.
    mask = jnp.broadcast_to(mask_ref[...], (BC, L))

    # Unrolled layer loop is the right choice for NL <= 4; for deep blocks
    # switch to lax.fori_loop with dynamic w_ref[l] / b_ref[l] indexing.
    for l in range(n_total_layers):
        # Direct per-tap MXU accumulation: each tap is ONE shifted slice of the
        # activation buffer for the whole batch (block-diag weights keep the
        # images independent).  No im2col staging buffer / stores at all.
        acc = None
        for kh in range(KH):
            for kw in range(KW):
                t = kh * KW + kw
                d = kh * Wp + kw
                part = jnp.dot(w_ref[l, t], act_ref[:, d:d + L],
                               preferred_element_type=jnp.float32)
                acc = part if acc is None else acc + part
        y = jnp.maximum(acc + b_ref[l], 0.0)                 # f32 bias + ReLU
        if l + 1 < n_total_layers:
            # Mask keeps halo columns exactly zero for the next layer's taps.
            act_ref[:, off:off + L] = (y * mask).astype(act_ref.dtype)
        else:
            # Final layer: mask dropped — wrapper slices the halo columns off.
            o_ref[0] = y.astype(o_ref.dtype)


# ---------------------------------------------------------------------------
# Wrapper: layout plumbing (NCHW <-> flat padded slabs) + the pallas_call.
# ---------------------------------------------------------------------------
def conv_block_forward(x_nchw, params, *, batch_block=4):
    N, cin0, H, W = x_nchw.shape
    NL = len(params)                          # n_layers + 1 conv layers total
    KH, KW = params[0][0].shape[2], params[0][0].shape[3]
    out_ch = params[-1][0].shape[0]

    # TODO(synk): PyTorch padding='same' pads asymmetrically for even kernel
    # sizes; only odd kernel sizes are handled here.
    assert KH % 2 == 1 and KW % 2 == 1, "even kernel_size not supported"
    assert all(w.shape[2] == KH and w.shape[3] == KW for w, _ in params)

    Cmax = max([cin0] + [w.shape[0] for w, _ in params]
               + [w.shape[1] for w, _ in params])
    Cmax = ((Cmax + 7) // 8) * 8              # sublane-aligned channel padding
    B = batch_block                           # images fused per grid step
    BC = B * Cmax
    T = KH * KW

    pad_t, pad_l = (KH - 1) // 2, (KW - 1) // 2
    Hp, Wp = H + KH - 1, W + KW - 1
    L = H * Wp                                # flattened output slab length
    BUF = Hp * Wp + (KW - 1)                  # covers every tap shift exactly
    off = pad_t * Wp + pad_l                  # interior start in flat buffer

    # ---- weights: channel-pad, per-tap block-diag over the batch, bf16 ----
    eye = jnp.eye(B, dtype=jnp.float32)
    w_list, b_list = [], []
    for w_oihw, b in params:
        co, ci = w_oihw.shape[0], w_oihw.shape[1]
        wp = jnp.zeros((Cmax, Cmax, KH, KW), jnp.float32).at[:co, :ci].set(
            w_oihw.astype(jnp.float32))
        wt = jnp.transpose(wp, (2, 3, 0, 1)).reshape(T, Cmax, Cmax)   # (T, co, ci)
        w_list.append(jnp.einsum("tij,ab->taibj", wt, eye).reshape(T, BC, BC))
        bp = jnp.zeros((Cmax,), jnp.float32).at[:co].set(b.astype(jnp.float32))
        b_list.append(jnp.tile(bp, B).reshape(BC, 1))
    w_all = jnp.stack(w_list).astype(jnp.bfloat16)    # (NL, T, BC, BC)
    b_all = jnp.stack(b_list)                         # (NL, BC, 1) f32

    # ---- input: batch-pad, channel-pad, right-pad rows W->Wp, flatten, bf16 ----
    Npad = -(-N // B) * B
    xw = jnp.pad(x_nchw.astype(jnp.float32),
                 ((0, Npad - N), (0, Cmax - cin0), (0, 0), (0, KW - 1)))
    xw = xw.reshape(Npad * Cmax, L).astype(jnp.bfloat16)

    # 1.0 on real output columns (w < W within each padded row), 0.0 on halo.
    mask = ((jnp.arange(L) % Wp) < W).astype(jnp.float32).reshape(1, L)

    G = Npad // B
    kernel = functools.partial(_conv_block_kernel, n_total_layers=NL,
                               KH=KH, KW=KW, Wp=Wp, L=L, off=off, BC=BC)

    out = pl.pallas_call(
        kernel,
        out_shape=jax.ShapeDtypeStruct((G, BC, L), jnp.float32),
        grid_spec=pltpu.PrefetchScalarGridSpec(
            num_scalar_prefetch=0,
            grid=(G,),
            in_specs=[
                pl.BlockSpec((BC, L), lambda g: (g, 0)),               # per step
                pl.BlockSpec((NL, T, BC, BC), lambda g: (0, 0, 0, 0)), # resident
                pl.BlockSpec((NL, BC, 1), lambda g: (0, 0, 0)),        # resident
                pl.BlockSpec((1, L), lambda g: (0, 0)),                # resident
            ],
            out_specs=pl.BlockSpec((1, BC, L), lambda g: (g, 0, 0)),
            scratch_shapes=[pltpu.VMEM((BC, BUF), jnp.bfloat16)],      # act buffer
        ),
        compiler_params=pltpu.CompilerParams(
            dimension_semantics=("parallel",)),       # v7x: 2 TCs split the batch
    )(xw, w_all, b_all, mask)

    # Undo layout plumbing: strip halo columns, padded channels, padded batch.
    return out.reshape(G * B, Cmax, H, Wp)[:N, :out_ch, :, :W]


# ---------------------------------------------------------------------------
# Parameter init (PyTorch OIHW convention) and a pure-JAX f32 reference.
# ---------------------------------------------------------------------------
def init_conv_block_params(key, n_layers, input_ch, output_ch, kernel_size):
    params = []
    chans = [(input_ch, output_ch)] + [(output_ch, output_ch)] * n_layers
    for i, (cin, cout) in enumerate(chans):
        kw_key, kb_key = jax.random.split(jax.random.fold_in(key, i))
        fan_in = cin * kernel_size * kernel_size
        scale = 1.0 / jnp.sqrt(jnp.float32(fan_in))
        w = jax.random.uniform(
            kw_key, (cout, cin, kernel_size, kernel_size),
            minval=-scale, maxval=scale, dtype=jnp.float32)
        b = jax.random.uniform(
            kb_key, (cout,), minval=-scale, maxval=scale, dtype=jnp.float32)
        params.append((w, b))
    return params


def conv_block_reference(x_nchw, params):
    x = x_nchw
    for w_oihw, b in params:
        y = jax.lax.conv_general_dilated(
            x, w_oihw, window_strides=(1, 1), padding="SAME",
            dimension_numbers=("NCHW", "OIHW", "NCHW"))
        x = jnp.maximum(y + b[None, :, None, None], 0.0)
    return x


if __name__ == "__main__":
    # ConvBlock hyper-params (consistent with the PyTorch module).
    n_layers, input_ch, output_ch, kernel_size = 2, 4, 8, 3
    N, H, W = 16, 16, 16     # N=16 -> 4 grid steps of 4 images (>=2 per TC on v7x)

    key = jax.random.PRNGKey(0)
    x_key, p_key = jax.random.split(key)
    x = jax.random.normal(x_key, (N, input_ch, H, W), dtype=jnp.float32)
    params = init_conv_block_params(p_key, n_layers, input_ch, output_ch,
                                    kernel_size)

    out = jax.block_until_ready(conv_block_forward(x, params))
    ref = jax.block_until_ready(conv_block_reference(x, params))

    assert out.shape == (N, output_ch, H, W)
    # bf16 storage for inputs/weights/activations -> looser tolerance than f32.
    assert jnp.allclose(out, ref, rtol=5e-2, atol=5e-2), \
        float(jnp.max(jnp.abs(out - ref)))

    print("KERNEL_OK")
</pallas_src>

<mosaic_0001>
module attributes {stable_mosaic.version = 11 : i64} {
  func.func @_conv_block_kernel(%arg0: i32, %arg1: memref<32x288xbf16, #tpu.memory_space<vmem>>, %arg2: memref<3x9x32x32xbf16, #tpu.memory_space<vmem>>, %arg3: memref<3x32x1xf32, #tpu.memory_space<vmem>>, %arg4: memref<1x288xf32, #tpu.memory_space<vmem>>, %arg5: memref<1x32x288xf32, #tpu.memory_space<vmem>>, %arg6: memref<32x326xbf16, #tpu.memory_space<vmem>>) attributes {dimension_semantics = [#tpu.dimension_semantics<parallel>], iteration_bounds = array<i64: 4>, scalar_prefetch = 0 : i64, scratch_operands = 1 : i64, tpu.core_type = #tpu.core_type<tc>, window_params = [{transform_indices = @transform_0, window_bounds = array<i64: 32, 288>}, {pipeline_mode = #tpu.pipeline_mode<synchronous>, transform_indices = @transform_1, window_bounds = array<i64: 3, 9, 32, 32>}, {pipeline_mode = #tpu.pipeline_mode<synchronous>, transform_indices = @transform_2, window_bounds = array<i64: 3, 32, 1>}, {pipeline_mode = #tpu.pipeline_mode<synchronous>, transform_indices = @transform_3, window_bounds = array<i64: 1, 288>}, {transform_indices = @transform_4, window_bounds = array<i64: 1, 32, 288>}]} {
    %cst = arith.constant 0.000000e+00 : bf16
    %0 = vector.broadcast %cst : bf16 to vector<32x326xbf16>
    %c0 = arith.constant 0 : index
    %c0_0 = arith.constant 0 : index
    %1 = vector.load %arg6[%c0, %c0_0] : memref<32x326xbf16, #tpu.memory_space<vmem>>, vector<32x326xbf16>
    tpu.vector_store %arg6[%c0, %c0_0], %0 {strides = array<i32>} : memref<32x326xbf16, #tpu.memory_space<vmem>>, vector<32x326xbf16>,
    %c0_1 = arith.constant 0 : index
    %c0_2 = arith.constant 0 : index
    %2 = vector.load %arg1[%c0_1, %c0_2] : memref<32x288xbf16, #tpu.memory_space<vmem>>, vector<32x288xbf16>
    %c0_3 = arith.constant 0 : index
    %c19 = arith.constant 19 : index
    %3 = vector.load %arg6[%c0_3, %c19] : memref<32x326xbf16, #tpu.memory_space<vmem>>, vector<32x288xbf16>
    tpu.vector_store %arg6[%c0_3, %c19], %2 {strides = array<i32>} : memref<32x326xbf16, #tpu.memory_space<vmem>>, vector<32x288xbf16>,
    %c0_4 = arith.constant 0 : index
    %c0_5 = arith.constant 0 : index
    %4 = vector.load %arg4[%c0_4, %c0_5] : memref<1x288xf32, #tpu.memory_space<vmem>>, vector<1x288xf32>
    %5 = vector.shape_cast %4 : vector<1x288xf32> to vector<1x288xf32>
    %6 = vector.broadcast %5 : vector<1x288xf32> to vector<32x288xf32>
    %c0_6 = arith.constant 0 : index
    %c0_7 = arith.constant 0 : index
    %c0_8 = arith.constant 0 : index
    %c0_9 = arith.constant 0 : index
    %7 = vector.load %arg2[%c0_6, %c0_7, %c0_8, %c0_9] : memref<3x9x32x32xbf16, #tpu.memory_space<vmem>>, vector<1x1x32x32xbf16>
    %8 = vector.shape_cast %7 : vector<1x1x32x32xbf16> to vector<32x32xbf16>
    %c0_10 = arith.constant 0 : index
    %c0_11 = arith.constant 0 : index
    %9 = vector.load %arg6[%c0_10, %c0_11] : memref<32x326xbf16, #tpu.memory_space<vmem>>, vector<32x288xbf16>
    %cst_12 = arith.constant dense<0.000000e+00> : vector<32x288xf32>
    %10 = tpu.matmul %8, %9, %cst_12 {dimension_numbers = #tpu.dot_dimension_numbers<[1], [0], [0], [1], [0, 0, 1, 1], [], []>} : vector<32x32xbf16>, vector<32x288xbf16>, vector<32x288xf32> -> vector<32x288xf32>
    %c0_13 = arith.constant 0 : index
    %c1 = arith.constant 1 : index
    %c0_14 = arith.constant 0 : index
    %c0_15 = arith.constant 0 : index
    %11 = vector.load %arg2[%c0_13, %c1, %c0_14, %c0_15] : memref<3x9x32x32xbf16, #tpu.memory_space<vmem>>, vector<1x1x32x32xbf16>
    %12 = vector.shape_cast %11 : vector<1x1x32x32xbf16> to vector<32x32xbf16>
    %c0_16 = arith.constant 0 : index
    %c1_17 = arith.constant 1 : index
    %13 = vector.load %arg6[%c0_16, %c1_17] : memref<32x326xbf16, #tpu.memory_space<vmem>>, vector<32x288xbf16>
    %cst_18 = arith.constant dense<0.000000e+00> : vector<32x288xf32>
    %14 = tpu.matmul %12, %13, %cst_18 {dimension_numbers = #tpu.dot_dimension_numbers<[1], [0], [0], [1], [0, 0, 1, 1], [], []>} : vector<32x32xbf16>, vector<32x288xbf16>, vector<32x288xf32> -> vector<32x288xf32>
    %15 = arith.addf %10, %14 : vector<32x288xf32>
    %c0_19 = arith.constant 0 : index
    %c2 = arith.constant 2 : index
    %c0_20 = arith.constant 0 : index
    %c0_21 = arith.constant 0 : index
    %16 = vector.load %arg2[%c0_19, %c2, %c0_20, %c0_21] : memref<3x9x32x32xbf16, #tpu.memory_space<vmem>>, vector<1x1x32x32xbf16>
    %17 = vector.shape_cast %16 : vector<1x1x32x32xbf16> to vector<32x32xbf16>
    %c0_22 = arith.constant 0 : index
    %c2_23 = arith.constant 2 : index
    %18 = vector.load %arg6[%c0_22, %c2_23] : memref<32x326xbf16, #tpu.memory_space<vmem>>, vector<32x288xbf16>
    %cst_24 = arith.constant dense<0.000000e+00> : vector<32x288xf32>
    %19 = tpu.matmul %17, %18, %cst_24 {dimension_numbers = #tpu.dot_dimension_numbers<[1], [0], [0], [1], [0, 0, 1, 1], [], []>} : vector<32x32xbf16>, vector<32x288xbf16>, vector<32x288xf32> -> vector<32x288xf32>
    %20 = arith.addf %15, %19 : vector<32x288xf32>
    %c0_25 = arith.constant 0 : index
    %c3 = arith.constant 3 : index
    %c0_26 = arith.constant 0 : index
    %c0_27 = arith.constant 0 : index
    %21 = vector.load %arg2[%c0_25, %c3, %c0_26, %c0_27] : memref<3x9x32x32xbf16, #tpu.memory_space<vmem>>, vector<1x1x32x32xbf16>
    %22 = vector.shape_cast %21 : vector<1x1x32x32xbf16> to vector<32x32xbf16>
    %c0_28 = arith.constant 0 : index
    %c18 = arith.constant 18 : index
    %23 = vector.load %arg6[%c0_28, %c18] : memref<32x326xbf16, #tpu.memory_space<vmem>>, vector<32x288xbf16>
    %cst_29 = arith.constant dense<0.000000e+00> : vector<32x288xf32>
    %24 = tpu.matmul %22, %23, %cst_29 {dimension_numbers = #tpu.dot_dimension_numbers<[1], [0], [0], [1], [0, 0, 1, 1], [], []>} : vector<32x32xbf16>, vector<32x288xbf16>, vector<32x288xf32> -> vector<32x288xf32>
    %25 = arith.addf %20, %24 : vector<32x288xf32>
    %c0_30 = arith.constant 0 : index
    %c4 = arith.constant 4 : index
    %c0_31 = arith.constant 0 : index
    %c0_32 = arith.constant 0 : index
    %26 = vector.load %arg2[%c0_30, %c4, %c0_31, %c0_32] : memref<3x9x32x32xbf16, #tpu.memory_space<vmem>>, vector<1x1x32x32xbf16>
    %27 = vector.shape_cast %26 : vector<1x1x32x32xbf16> to vector<32x32xbf16>
    %c0_33 = arith.constant 0 : index
    %c19_34 = arith.constant 19 : index
    %28 = vector.load %arg6[%c0_33, %c19_34] : memref<32x326xbf16, #tpu.memory_space<vmem>>, vector<32x288xbf16>
    %cst_35 = arith.constant dense<0.000000e+00> : vector<32x288xf32>
    %29 = tpu.matmul %27, %28, %cst_35 {dimension_numbers = #tpu.dot_dimension_numbers<[1], [0], [0], [1], [0, 0, 1, 1], [], []>} : vector<32x32xbf16>, vector<32x288xbf16>, vector<32x288xf32> -> vector<32x288xf32>
    %30 = arith.addf %25, %29 : vector<32x288xf32>
    %c0_36 = arith.constant 0 : index
    %c5 = arith.constant 5 : index
    %c0_37 = arith.constant 0 : index
    %c0_38 = arith.constant 0 : index
    %31 = vector.load %arg2[%c0_36, %c5, %c0_37, %c0_38] : memref<3x9x32x32xbf16, #tpu.memory_space<vmem>>, vector<1x1x32x32xbf16>
    %32 = vector.shape_cast %31 : vector<1x1x32x32xbf16> to vector<32x32xbf16>
    %c0_39 = arith.constant 0 : index
    %c20 = arith.constant 20 : index
    %33 = vector.load %arg6[%c0_39, %c20] : memref<32x326xbf16, #tpu.memory_space<vmem>>, vector<32x288xbf16>
    %cst_40 = arith.constant dense<0.000000e+00> : vector<32x288xf32>
    %34 = tpu.matmul %32, %33, %cst_40 {dimension_numbers = #tpu.dot_dimension_numbers<[1], [0], [0], [1], [0, 0, 1, 1], [], []>} : vector<32x32xbf16>, vector<32x288xbf16>, vector<32x288xf32> -> vector<32x288xf32>
    %35 = arith.addf %30, %34 : vector<32x288xf32>
    %c0_41 = arith.constant 0 : index
    %c6 = arith.constant 6 : index
    %c0_42 = arith.constant 0 : index
    %c0_43 = arith.constant 0 : index
    %36 = vector.load %arg2[%c0_41, %c6, %c0_42, %c0_43] : memref<3x9x32x32xbf16, #tpu.memory_space<vmem>>, vector<1x1x32x32xbf16>
    %37 = vector.shape_cast %36 : vector<1x1x32x32xbf16> to vector<32x32xbf16>
    %c0_44 = arith.constant 0 : index
    %c36 = arith.constant 36 : index
    %38 = vector.load %arg6[%c0_44, %c36] : memref<32x326xbf16, #tpu.memory_space<vmem>>, vector<32x288xbf16>
    %cst_45 = arith.constant dense<0.000000e+00> : vector<32x288xf32>
    %39 = tpu.matmul %37, %38, %cst_45 {dimension_numbers = #tpu.dot_dimension_numbers<[1], [0], [0], [1], [0, 0, 1, 1], [], []>} : vector<32x32xbf16>, vector<32x288xbf16>, vector<32x288xf32> -> vector<32x288xf32>
    %40 = arith.addf %35, %39 : vector<32x288xf32>
    %c0_46 = arith.constant 0 : index
    %c7 = arith.constant 7 : index
    %c0_47 = arith.constant 0 : index
    %c0_48 = arith.constant 0 : index
    %41 = vector.load %arg2[%c0_46, %c7, %c0_47, %c0_48] : memref<3x9x32x32xbf16, #tpu.memory_space<vmem>>, vector<1x1x32x32xbf16>
    %42 = vector.shape_cast %41 : vector<1x1x32x32xbf16> to vector<32x32xbf16>
    %c0_49 = arith.constant 0 : index
    %c37 = arith.constant 37 : index
    %43 = vector.load %arg6[%c0_49, %c37] : memref<32x326xbf16, #tpu.memory_space<vmem>>, vector<32x288xbf16>
    %cst_50 = arith.constant dense<0.000000e+00> : vector<32x288xf32>
    %44 = tpu.matmul %42, %43, %cst_50 {dimension_numbers = #tpu.dot_dimension_numbers<[1], [0], [0], [1], [0, 0, 1, 1], [], []>} : vector<32x32xbf16>, vector<32x288xbf16>, vector<32x288xf32> -> vector<32x288xf32>
    %45 = arith.addf %40, %44 : vector<32x288xf32>
    %c0_51 = arith.constant 0 : index
    %c8 = arith.constant 8 : index
    %c0_52 = arith.constant 0 : index
    %c0_53 = arith.constant 0 : index
    %46 = vector.load %arg2[%c0_51, %c8, %c0_52, %c0_53] : memref<3x9x32x32xbf16, #tpu.memory_space<vmem>>, vector<1x1x32x32xbf16>
    %47 = vector.shape_cast %46 : vector<1x1x32x32xbf16> to vector<32x32xbf16>
    %c0_54 = arith.constant 0 : index
    %c38 = arith.constant 38 : index
    %48 = vector.load %arg6[%c0_54, %c38] : memref<32x326xbf16, #tpu.memory_space<vmem>>, vector<32x288xbf16>
    %cst_55 = arith.constant dense<0.000000e+00> : vector<32x288xf32>
    %49 = tpu.matmul %47, %48, %cst_55 {dimension_numbers = #tpu.dot_dimension_numbers<[1], [0], [0], [1], [0, 0, 1, 1], [], []>} : vector<32x32xbf16>, vector<32x288xbf16>, vector<32x288xf32> -> vector<32x288xf32>
    %50 = arith.addf %45, %49 : vector<32x288xf32>
    %c0_56 = arith.constant 0 : index
    %c0_57 = arith.constant 0 : index
    %c0_58 = arith.constant 0 : index
    %51 = vector.load %arg3[%c0_56, %c0_57, %c0_58] : memref<3x32x1xf32, #tpu.memory_space<vmem>>, vector<1x32x1xf32>
    %52 = vector.shape_cast %51 : vector<1x32x1xf32> to vector<32x1xf32>
    %53 = vector.broadcast %52 : vector<32x1xf32> to vector<32x288xf32>
    %54 = arith.addf %50, %53 : vector<32x288xf32>
    %cst_59 = arith.constant 0.000000e+00 : f32
    %55 = vector.broadcast %cst_59 : f32 to vector<32x288xf32>
    %56 = arith.maximumf %54, %55 : vector<32x288xf32>
    %57 = arith.mulf %56, %6 : vector<32x288xf32>
    %58 = arith.truncf %57 : vector<32x288xf32> to vector<32x288xbf16>
    %c0_60 = arith.constant 0 : index
    %c19_61 = arith.constant 19 : index
    %59 = vector.load %arg6[%c0_60, %c19_61] : memref<32x326xbf16, #tpu.memory_space<vmem>>, vector<32x288xbf16>
    tpu.vector_store %arg6[%c0_60, %c19_61], %58 {strides = array<i32>} : memref<32x326xbf16, #tpu.memory_space<vmem>>, vector<32x288xbf16>,
    %c1_62 = arith.constant 1 : index
    %c0_63 = arith.constant 0 : index
    %c0_64 = arith.constant 0 : index
    %c0_65 = arith.constant 0 : index
    %60 = vector.load %arg2[%c1_62, %c0_63, %c0_64, %c0_65] : memref<3x9x32x32xbf16, #tpu.memory_space<vmem>>, vector<1x1x32x32xbf16>
    %61 = vector.shape_cast %60 : vector<1x1x32x32xbf16> to vector<32x32xbf16>
    %c0_66 = arith.constant 0 : index
    %c0_67 = arith.constant 0 : index
    %62 = vector.load %arg6[%c0_66, %c0_67] : memref<32x326xbf16, #tpu.memory_space<vmem>>, vector<32x288xbf16>
    %cst_68 = arith.constant dense<0.000000e+00> : vector<32x288xf32>
    %63 = tpu.matmul %61, %62, %cst_68 {dimension_numbers = #tpu.dot_dimension_numbers<[1], [0], [0], [1], [0, 0, 1, 1], [], []>} : vector<32x32xbf16>, vector<32x288xbf16>, vector<32x288xf32> -> vector<32x288xf32>
    %c1_69 = arith.constant 1 : index
    %c1_70 = arith.constant 1 : index
    %c0_71 = arith.constant 0 : index
    %c0_72 = arith.constant 0 : index
    %64 = vector.load %arg2[%c1_69, %c1_70, %c0_71, %c0_72] : memref<3x9x32x32xbf16, #tpu.memory_space<vmem>>, vector<1x1x32x32xbf16>
    %65 = vector.shape_cast %64 : vector<1x1x32x32xbf16> to vector<32x32xbf16>
    %c0_73 = arith.constant 0 : index
    %c1_74 = arith.constant 1 : index
    %66 = vector.load %arg6[%c0_73, %c1_74] : memref<32x326xbf16, #tpu.memory_space<vmem>>, vector<32x288xbf16>
    %cst_75 = arith.constant dense<0.000000e+00> : vector<32x288xf32>
    %67 = tpu.matmul %65, %66, %cst_75 {dimension_numbers = #tpu.dot_dimension_numbers<[1], [0], [0], [1], [0, 0, 1, 1], [], []>} : vector<32x32xbf16>, vector<32x288xbf16>, vector<32x288xf32> -> vector<32x288xf32>
    %68 = arith.addf %63, %67 : vector<32x288xf32>
    %c1_76 = arith.constant 1 : index
    %c2_77 = arith.constant 2 : index
    %c0_78 = arith.constant 0 : index
    %c0_79 = arith.constant 0 : index
    %69 = vector.load %arg2[%c1_76, %c2_77, %c0_78, %c0_79] : memref<3x9x32x32xbf16, #tpu.memory_space<vmem>>, vector<1x1x32x32xbf16>
    %70 = vector.shape_cast %69 : vector<1x1x32x32xbf16> to vector<32x32xbf16>
    %c0_80 = arith.constant 0 : index
    %c2_81 = arith.constant 2 : index
    %71 = vector.load %arg6[%c0_80, %c2_81] : memref<32x326xbf16, #tpu.memory_space<vmem>>, vector<32x288xbf16>
    %cst_82 = arith.constant dense<0.000000e+00> : vector<32x288xf32>
    %72 = tpu.matmul %70, %71, %cst_82 {dimension_numbers = #tpu.dot_dimension_numbers<[1], [0], [0], [1], [0, 0, 1, 1], [], []>} : vector<32x32xbf16>, vector<32x288xbf16>, vector<32x288xf32> -> vector<32x288xf32>
    %73 = arith.addf %68, %72 : vector<32x288xf32>
    %c1_83 = arith.constant 1 : index
    %c3_84 = arith.constant 3 : index
    %c0_85 = arith.constant 0 : index
    %c0_86 = arith.constant 0 : index
    %74 = vector.load %arg2[%c1_83, %c3_84, %c0_85, %c0_86] : memref<3x9x32x32xbf16, #tpu.memory_space<vmem>>, vector<1x1x32x32xbf16>
    %75 = vector.shape_cast %74 : vector<1x1x32x32xbf16> to vector<32x32xbf16>
    %c0_87 = arith.constant 0 : index
    %c18_88 = arith.constant 18 : index
    %76 = vector.load %arg6[%c0_87, %c18_88] : memref<32x326xbf16, #tpu.memory_space<vmem>>, vector<32x288xbf16>
    %cst_89 = arith.constant dense<0.000000e+00> : vector<32x288xf32>
    %77 = tpu.matmul %75, %76, %cst_89 {dimension_numbers = #tpu.dot_dimension_numbers<[1], [0], [0], [1], [0, 0, 1, 1], [], []>} : vector<32x32xbf16>, vector<32x288xbf16>, vector<32x288xf32> -> vector<32x288xf32>
    %78 = arith.addf %73, %77 : vector<32x288xf32>
    %c1_90 = arith.constant 1 : index
    %c4_91 = arith.constant 4 : index
    %c0_92 = arith.constant 0 : index
    %c0_93 = arith.constant 0 : index
    %79 = vector.load %arg2[%c1_90, %c4_91, %c0_92, %c0_93] : memref<3x9x32x32xbf16, #tpu.memory_space<vmem>>, vector<1x1x32x32xbf16>
    %80 = vector.shape_cast %79 : vector<1x1x32x32xbf16> to vector<32x32xbf16>
    %c0_94 = arith.constant 0 : index
    %c19_95 = arith.constant 19 : index
    %81 = vector.load %arg6[%c0_94, %c19_95] : memref<32x326xbf16, #tpu.memory_space<vmem>>, vector<32x288xbf16>
    %cst_96 = arith.constant dense<0.000000e+00> : vector<32x288xf32>
    %82 = tpu.matmul %80, %81, %cst_96 {dimension_numbers = #tpu.dot_dimension_numbers<[1], [0], [0], [1], [0, 0, 1, 1], [], []>} : vector<32x32xbf16>, vector<32x288xbf16>, vector<32x288xf32> -> vector<32x288xf32>
    %83 = arith.addf %78, %82 : vector<32x288xf32>
    %c1_97 = arith.constant 1 : index
    %c5_98 = arith.constant 5 : index
    %c0_99 = arith.constant 0 : index
    %c0_100 = arith.constant 0 : index
    %84 = vector.load %arg2[%c1_97, %c5_98, %c0_99, %c0_100] : memref<3x9x32x32xbf16, #tpu.memory_space<vmem>>, vector<1x1x32x32xbf16>
    %85 = vector.shape_cast %84 : vector<1x1x32x32xbf16> to vector<32x32xbf16>
    %c0_101 = arith.constant 0 : index
    %c20_102 = arith.constant 20 : index
    %86 = vector.load %arg6[%c0_101, %c20_102] : memref<32x326xbf16, #tpu.memory_space<vmem>>, vector<32x288xbf16>
    %cst_103 = arith.constant dense<0.000000e+00> : vector<32x288xf32>
    %87 = tpu.matmul %85, %86, %cst_103 {dimension_numbers = #tpu.dot_dimension_numbers<[1], [0], [0], [1], [0, 0, 1, 1], [], []>} : vector<32x32xbf16>, vector<32x288xbf16>, vector<32x288xf32> -> vector<32x288xf32>
    %88 = arith.addf %83, %87 : vector<32x288xf32>
    %c1_104 = arith.constant 1 : index
    %c6_105 = arith.constant 6 : index
    %c0_106 = arith.constant 0 : index
    %c0_107 = arith.constant 0 : index
    %89 = vector.load %arg2[%c1_104, %c6_105, %c0_106, %c0_107] : memref<3x9x32x32xbf16, #tpu.memory_space<vmem>>, vector<1x1x32x32xbf16>
    %90 = vector.shape_cast %89 : vector<1x1x32x32xbf16> to vector<32x32xbf16>
    %c0_108 = arith.constant 0 : index
    %c36_109 = arith.constant 36 : index
    %91 = vector.load %arg6[%c0_108, %c36_109] : memref<32x326xbf16, #tpu.memory_space<vmem>>, vector<32x288xbf16>
    %cst_110 = arith.constant dense<0.000000e+00> : vector<32x288xf32>
    %92 = tpu.matmul %90, %91, %cst_110 {dimension_numbers = #tpu.dot_dimension_numbers<[1], [0], [0], [1], [0, 0, 1, 1], [], []>} : vector<32x32xbf16>, vector<32x288xbf16>, vector<32x288xf32> -> vector<32x288xf32>
    %93 = arith.addf %88, %92 : vector<32x288xf32>
    %c1_111 = arith.constant 1 : index
    %c7_112 = arith.constant 7 : index
    %c0_113 = arith.constant 0 : index
    %c0_114 = arith.constant 0 : index
    %94 = vector.load %arg2[%c1_111, %c7_112, %c0_113, %c0_114] : memref<3x9x32x32xbf16, #tpu.memory_space<vmem>>, vector<1x1x32x32xbf16>
    %95 = vector.shape_cast %94 : vector<1x1x32x32xbf16> to vector<32x32xbf16>
    %c0_115 = arith.constant 0 : index
    %c37_116 = arith.constant 37 : index
    %96 = vector.load %arg6[%c0_115, %c37_116] : memref<32x326xbf16, #tpu.memory_space<vmem>>, vector<32x288xbf16>
    %cst_117 = arith.constant dense<0.000000e+00> : vector<32x288xf32>
    %97 = tpu.matmul %95, %96, %cst_117 {dimension_numbers = #tpu.dot_dimension_numbers<[1], [0], [0], [1], [0, 0, 1, 1], [], []>} : vector<32x32xbf16>, vector<32x288xbf16>, vector<32x288xf32> -> vector<32x288xf32>
    %98 = arith.addf %93, %97 : vector<32x288xf32>
    %c1_118 = arith.constant 1 : index
    %c8_119 = arith.constant 8 : index
    %c0_120 = arith.constant 0 : index
    %c0_121 = arith.constant 0 : index
    %99 = vector.load %arg2[%c1_118, %c8_119, %c0_120, %c0_121] : memref<3x9x32x32xbf16, #tpu.memory_space<vmem>>, vector<1x1x32x32xbf16>
    %100 = vector.shape_cast %99 : vector<1x1x32x32xbf16> to vector<32x32xbf16>
    %c0_122 = arith.constant 0 : index
    %c38_123 = arith.constant 38 : index
    %101 = vector.load %arg6[%c0_122, %c38_123] : memref<32x326xbf16, #tpu.memory_space<vmem>>, vector<32x288xbf16>
    %cst_124 = arith.constant dense<0.000000e+00> : vector<32x288xf32>
    %102 = tpu.matmul %100, %101, %cst_124 {dimension_numbers = #tpu.dot_dimension_numbers<[1], [0], [0], [1], [0, 0, 1, 1], [], []>} : vector<32x32xbf16>, vector<32x288xbf16>, vector<32x288xf32> -> vector<32x288xf32>
    %103 = arith.addf %98, %102 : vector<32x288xf32>
    %c1_125 = arith.constant 1 : index
    %c0_126 = arith.constant 0 : index
    %c0_127 = arith.constant 0 : index
    %104 = vector.load %arg3[%c1_125, %c0_126, %c0_127] : memref<3x32x1xf32, #tpu.memory_space<vmem>>, vector<1x32x1xf32>
    %105 = vector.shape_cast %104 : vector<1x32x1xf32> to vector<32x1xf32>
    %106 = vector.broadcast %105 : vector<32x1xf32> to vector<32x288xf32>
    %107 = arith.addf %103, %106 : vector<32x288xf32>
    %cst_128 = arith.constant 0.000000e+00 : f32
    %108 = vector.broadcast %cst_128 : f32 to vector<32x288xf32>
    %109 = arith.maximumf %107, %108 : vector<32x288xf32>
    %110 = arith.mulf %109, %6 : vector<32x288xf32>
    %111 = arith.truncf %110 : vector<32x288xf32> to vector<32x288xbf16>
    %c0_129 = arith.constant 0 : index
    %c19_130 = arith.constant 19 : index
    %112 = vector.load %arg6[%c0_129, %c19_130] : memref<32x326xbf16, #tpu.memory_space<vmem>>, vector<32x288xbf16>
    tpu.vector_store %arg6[%c0_129, %c19_130], %111 {strides = array<i32>} : memref<32x326xbf16, #tpu.memory_space<vmem>>, vector<32x288xbf16>,
    %c2_131 = arith.constant 2 : index
    %c0_132 = arith.constant 0 : index
    %c0_133 = arith.constant 0 : index
    %c0_134 = arith.constant 0 : index
    %113 = vector.load %arg2[%c2_131, %c0_132, %c0_133, %c0_134] : memref<3x9x32x32xbf16, #tpu.memory_space<vmem>>, vector<1x1x32x32xbf16>
    %114 = vector.shape_cast %113 : vector<1x1x32x32xbf16> to vector<32x32xbf16>
    %c0_135 = arith.constant 0 : index
    %c0_136 = arith.constant 0 : index
    %115 = vector.load %arg6[%c0_135, %c0_136] : memref<32x326xbf16, #tpu.memory_space<vmem>>, vector<32x288xbf16>
    %cst_137 = arith.constant dense<0.000000e+00> : vector<32x288xf32>
    %116 = tpu.matmul %114, %115, %cst_137 {dimension_numbers = #tpu.dot_dimension_numbers<[1], [0], [0], [1], [0, 0, 1, 1], [], []>} : vector<32x32xbf16>, vector<32x288xbf16>, vector<32x288xf32> -> vector<32x288xf32>
    %c2_138 = arith.constant 2 : index
    %c1_139 = arith.constant 1 : index
    %c0_140 = arith.constant 0 : index
    %c0_141 = arith.constant 0 : index
    %117 = vector.load %arg2[%c2_138, %c1_139, %c0_140, %c0_141] : memref<3x9x32x32xbf16, #tpu.memory_space<vmem>>, vector<1x1x32x32xbf16>
    %118 = vector.shape_cast %117 : vector<1x1x32x32xbf16> to vector<32x32xbf16>
    %c0_142 = arith.constant 0 : index
    %c1_143 = arith.constant 1 : index
    %119 = vector.load %arg6[%c0_142, %c1_143] : memref<32x326xbf16, #tpu.memory_space<vmem>>, vector<32x288xbf16>
    %cst_144 = arith.constant dense<0.000000e+00> : vector<32x288xf32>
    %120 = tpu.matmul %118, %119, %cst_144 {dimension_numbers = #tpu.dot_dimension_numbers<[1], [0], [0], [1], [0, 0, 1, 1], [], []>} : vector<32x32xbf16>, vector<32x288xbf16>, vector<32x288xf32> -> vector<32x288xf32>
    %121 = arith.addf %116, %120 : vector<32x288xf32>
    %c2_145 = arith.constant 2 : index
    %c2_146 = arith.constant 2 : index
    %c0_147 = arith.constant 0 : index
    %c0_148 = arith.constant 0 : index
    %122 = vector.load %arg2[%c2_145, %c2_146, %c0_147, %c0_148] : memref<3x9x32x32xbf16, #tpu.memory_space<vmem>>, vector<1x1x32x32xbf16>
    %123 = vector.shape_cast %122 : vector<1x1x32x32xbf16> to vector<32x32xbf16>
    %c0_149 = arith.constant 0 : index
    %c2_150 = arith.constant 2 : index
    %124 = vector.load %arg6[%c0_149, %c2_150] : memref<32x326xbf16, #tpu.memory_space<vmem>>, vector<32x288xbf16>
    %cst_151 = arith.constant dense<0.000000e+00> : vector<32x288xf32>
    %125 = tpu.matmul %123, %124, %cst_151 {dimension_numbers = #tpu.dot_dimension_numbers<[1], [0], [0], [1], [0, 0, 1, 1], [], []>} : vector<32x32xbf16>, vector<32x288xbf16>, vector<32x288xf32> -> vector<32x288xf32>
    %126 = arith.addf %121, %125 : vector<32x288xf32>
    %c2_152 = arith.constant 2 : index
    %c3_153 = arith.constant 3 : index
    %c0_154 = arith.constant 0 : index
    %c0_155 = arith.constant 0 : index
    %127 = vector.load %arg2[%c2_152, %c3_153, %c0_154, %c0_155] : memref<3x9x32x32xbf16, #tpu.memory_space<vmem>>, vector<1x1x32x32xbf16>
    %128 = vector.shape_cast %127 : vector<1x1x32x32xbf16> to vector<32x32xbf16>
    %c0_156 = arith.constant 0 : index
    %c18_157 = arith.constant 18 : index
    %129 = vector.load %arg6[%c0_156, %c18_157] : memref<32x326xbf16, #tpu.memory_space<vmem>>, vector<32x288xbf16>
    %cst_158 = arith.constant dense<0.000000e+00> : vector<32x288xf32>
    %130 = tpu.matmul %128, %129, %cst_158 {dimension_numbers = #tpu.dot_dimension_numbers<[1], [0], [0], [1], [0, 0, 1, 1], [], []>} : vector<32x32xbf16>, vector<32x288xbf16>, vector<32x288xf32> -> vector<32x288xf32>
    %131 = arith.addf %126, %130 : vector<32x288xf32>
    %c2_159 = arith.constant 2 : index
    %c4_160 = arith.constant 4 : index
    %c0_161 = arith.constant 0 : index
    %c0_162 = arith.constant 0 : index
    %132 = vector.load %arg2[%c2_159, %c4_160, %c0_161, %c0_162] : memref<3x9x32x32xbf16, #tpu.memory_space<vmem>>, vector<1x1x32x32xbf16>
    %133 = vector.shape_cast %132 : vector<1x1x32x32xbf16> to vector<32x32xbf16>
    %c0_163 = arith.constant 0 : index
    %c19_164 = arith.constant 19 : index
    %134 = vector.load %arg6[%c0_163, %c19_164] : memref<32x326xbf16, #tpu.memory_space<vmem>>, vector<32x288xbf16>
    %cst_165 = arith.constant dense<0.000000e+00> : vector<32x288xf32>
    %135 = tpu.matmul %133, %134, %cst_165 {dimension_numbers = #tpu.dot_dimension_numbers<[1], [0], [0], [1], [0, 0, 1, 1], [], []>} : vector<32x32xbf16>, vector<32x288xbf16>, vector<32x288xf32> -> vector<32x288xf32>
    %136 = arith.addf %131, %135 : vector<32x288xf32>
    %c2_166 = arith.constant 2 : index
    %c5_167 = arith.constant 5 : index
    %c0_168 = arith.constant 0 : index
    %c0_169 = arith.constant 0 : index
    %137 = vector.load %arg2[%c2_166, %c5_167, %c0_168, %c0_169] : memref<3x9x32x32xbf16, #tpu.memory_space<vmem>>, vector<1x1x32x32xbf16>
    %138 = vector.shape_cast %137 : vector<1x1x32x32xbf16> to vector<32x32xbf16>
    %c0_170 = arith.constant 0 : index
    %c20_171 = arith.constant 20 : index
    %139 = vector.load %arg6[%c0_170, %c20_171] : memref<32x326xbf16, #tpu.memory_space<vmem>>, vector<32x288xbf16>
    %cst_172 = arith.constant dense<0.000000e+00> : vector<32x288xf32>
    %140 = tpu.matmul %138, %139, %cst_172 {dimension_numbers = #tpu.dot_dimension_numbers<[1], [0], [0], [1], [0, 0, 1, 1], [], []>} : vector<32x32xbf16>, vector<32x288xbf16>, vector<32x288xf32> -> vector<32x288xf32>
    %141 = arith.addf %136, %140 : vector<32x288xf32>
    %c2_173 = arith.constant 2 : index
    %c6_174 = arith.constant 6 : index
    %c0_175 = arith.constant 0 : index
    %c0_176 = arith.constant 0 : index
    %142 = vector.load %arg2[%c2_173, %c6_174, %c0_175, %c0_176] : memref<3x9x32x32xbf16, #tpu.memory_space<vmem>>, vector<1x1x32x32xbf16>
    %143 = vector.shape_cast %142 : vector<1x1x32x32xbf16> to vector<32x32xbf16>
    %c0_177 = arith.constant 0 : index
    %c36_178 = arith.constant 36 : index
    %144 = vector.load %arg6[%c0_177, %c36_178] : memref<32x326xbf16, #tpu.memory_space<vmem>>, vector<32x288xbf16>
    %cst_179 = arith.constant dense<0.000000e+00> : vector<32x288xf32>
    %145 = tpu.matmul %143, %144, %cst_179 {dimension_numbers = #tpu.dot_dimension_numbers<[1], [0], [0], [1], [0, 0, 1, 1], [], []>} : vector<32x32xbf16>, vector<32x288xbf16>, vector<32x288xf32> -> vector<32x288xf32>
    %146 = arith.addf %141, %145 : vector<32x288xf32>
    %c2_180 = arith.constant 2 : index
    %c7_181 = arith.constant 7 : index
    %c0_182 = arith.constant 0 : index
    %c0_183 = arith.constant 0 : index
    %147 = vector.load %arg2[%c2_180, %c7_181, %c0_182, %c0_183] : memref<3x9x32x32xbf16, #tpu.memory_space<vmem>>, vector<1x1x32x32xbf16>
    %148 = vector.shape_cast %147 : vector<1x1x32x32xbf16> to vector<32x32xbf16>
    %c0_184 = arith.constant 0 : index
    %c37_185 = arith.constant 37 : index
    %149 = vector.load %arg6[%c0_184, %c37_185] : memref<32x326xbf16, #tpu.memory_space<vmem>>, vector<32x288xbf16>
    %cst_186 = arith.constant dense<0.000000e+00> : vector<32x288xf32>
    %150 = tpu.matmul %148, %149, %cst_186 {dimension_numbers = #tpu.dot_dimension_numbers<[1], [0], [0], [1], [0, 0, 1, 1], [], []>} : vector<32x32xbf16>, vector<32x288xbf16>, vector<32x288xf32> -> vector<32x288xf32>
    %151 = arith.addf %146, %150 : vector<32x288xf32>
    %c2_187 = arith.constant 2 : index
    %c8_188 = arith.constant 8 : index
    %c0_189 = arith.constant 0 : index
    %c0_190 = arith.constant 0 : index
    %152 = vector.load %arg2[%c2_187, %c8_188, %c0_189, %c0_190] : memref<3x9x32x32xbf16, #tpu.memory_space<vmem>>, vector<1x1x32x32xbf16>
    %153 = vector.shape_cast %152 : vector<1x1x32x32xbf16> to vector<32x32xbf16>
    %c0_191 = arith.constant 0 : index
    %c38_192 = arith.constant 38 : index
    %154 = vector.load %arg6[%c0_191, %c38_192] : memref<32x326xbf16, #tpu.memory_space<vmem>>, vector<32x288xbf16>
    %cst_193 = arith.constant dense<0.000000e+00> : vector<32x288xf32>
    %155 = tpu.matmul %153, %154, %cst_193 {dimension_numbers = #tpu.dot_dimension_numbers<[1], [0], [0], [1], [0, 0, 1, 1], [], []>} : vector<32x32xbf16>, vector<32x288xbf16>, vector<32x288xf32> -> vector<32x288xf32>
    %156 = arith.addf %151, %155 : vector<32x288xf32>
    %c2_194 = arith.constant 2 : index
    %c0_195 = arith.constant 0 : index
    %c0_196 = arith.constant 0 : index
    %157 = vector.load %arg3[%c2_194, %c0_195, %c0_196] : memref<3x32x1xf32, #tpu.memory_space<vmem>>, vector<1x32x1xf32>
    %158 = vector.shape_cast %157 : vector<1x32x1xf32> to vector<32x1xf32>
    %159 = vector.broadcast %158 : vector<32x1xf32> to vector<32x288xf32>
    %160 = arith.addf %156, %159 : vector<32x288xf32>
    %cst_197 = arith.constant 0.000000e+00 : f32
    %161 = vector.broadcast %cst_197 : f32 to vector<32x288xf32>
    %162 = arith.maximumf %160, %161 : vector<32x288xf32>
    %c0_198 = arith.constant 0 : index
    %c0_199 = arith.constant 0 : index
    %c0_200 = arith.constant 0 : index
    %163 = vector.load %arg5[%c0_198, %c0_199, %c0_200] : memref<1x32x288xf32, #tpu.memory_space<vmem>>, vector<1x32x288xf32>
    %164 = vector.shape_cast %163 : vector<1x32x288xf32> to vector<32x288xf32>
    %165 = vector.shape_cast %162 : vector<32x288xf32> to vector<1x32x288xf32>
    tpu.vector_store %arg5[%c0_198, %c0_199, %c0_200], %165 {strides = array<i32>} : memref<1x32x288xf32, #tpu.memory_space<vmem>>, vector<1x32x288xf32>,
    return
  }
  func.func @transform_0(%arg0: i32) -> (i32, i32) {
    %c0_i32 = arith.constant 0 : i32
    %c0_i32_0 = arith.constant 0 : i32
    return %arg0, %c0_i32 : i32, i32
  }
  func.func @transform_1(%arg0: i32) -> (i32, i32, i32, i32) {
    %c0_i32 = arith.constant 0 : i32
    %c0_i32_0 = arith.constant 0 : i32
    %c0_i32_1 = arith.constant 0 : i32
    %c0_i32_2 = arith.constant 0 : i32
    %c0_i32_3 = arith.constant 0 : i32
    return %c0_i32, %c0_i32_0, %c0_i32_1, %c0_i32_2 : i32, i32, i32, i32
  }
  func.func @transform_2(%arg0: i32) -> (i32, i32, i32) {
    %c0_i32 = arith.constant 0 : i32
    %c0_i32_0 = arith.constant 0 : i32
    %c0_i32_1 = arith.constant 0 : i32
    %c0_i32_2 = arith.constant 0 : i32
    return %c0_i32, %c0_i32_0, %c0_i32_1 : i32, i32, i32
  }
  func.func @transform_3(%arg0: i32) -> (i32, i32) {
    %c0_i32 = arith.constant 0 : i32
    %c0_i32_0 = arith.constant 0 : i32
    %c0_i32_1 = arith.constant 0 : i32
    return %c0_i32, %c0_i32_0 : i32, i32
  }
  func.func @transform_4(%arg0: i32) -> (i32, i32, i32) {
    %c0_i32 = arith.constant 0 : i32
    %c0_i32_0 = arith.constant 0 : i32
    %c0_i32_1 = arith.constant 0 : i32
    return %arg0, %c0_i32, %c0_i32_0 : i32, i32, i32
  }
}

</mosaic_0001>

<bundles_post_ra>
// kernel: tpu_custom_call.1
= control target key start
LH: loop header
LB: loop body
LE: loop exit
PB: predicated region body
PF: predicated region fallthrough
CT: control target
= control target key end

     0   :  { %9 = vsyncpa [#allocation4], 0  ;;  %s6968_s0 = inlined_call_operand.vmem [shape: bf16[128,288], index: 0, kind: input, shape index: {}]   ;;  %s6969_s1 = inlined_call_operand.vmem [shape: bf16[3,9,32,32], index: 1, kind: input, shape index: {}]   ;;  %s6970_s2 = inlined_call_operand.vmem [shape: f32[3,32,1], index: 2, kind: input, shape index: {}]   ;;  %s6971_s3 = inlined_call_operand.vmem [shape: f32[1,288], index: 3, kind: input, shape index: {}]   ;;  %s6972_s4 = inlined_call_operand.hbm [shape: f32[4,32,288], index: 4, kind: output, shape index: {}]  }
   0x1   :  { %11 = vsyncpa [#allocation4 + $0x1], 0  ;;  %s5895_s15 = smov 0   ;;  %s5897_s16 = smov 0  }
   0x2   :  { %s5899_s17 = smov 0   ;;  %s5901_s18 = smov 0  }
   0x3 LB: > { %s5916_s19 = sadd.s32 4294967295, %s5855_s18   ;;  %s4774_s20 = sadd.s32 4294967294, %s5855_s18   ;;  %s5855_s18 = sphi %s5901_s18, %s6978_s18   ;;  %s5851_s17 = sphi %s5899_s17, %s6977_s17   ;;  %s5847_s16 = sphi %s5897_s16, %s6976_s16   ;;  %s5843_s15 = sphi %s5895_s15, %s6975_s15  }
   0x4   : > { %s5920_s21 = sadd.s32 1, %s5855_s18   ;;  %s113_s22 = sadd.s32 1, %s5851_s17 }
   0x5   : > { %s110_s23 = ssub.s32 %s5855_s18, %s5920_s21  ;;  %p123_p0 = scmp.ne.s32.totalorder %s5851_s17, %s5847_s16 }
   0x6   : > { %p111_p1 = scmp.eq.s32.totalorder %s110_s23, 0  ;;  %p124_p2 = scmp.eq.s32.totalorder %s5916_s19, 3 }
   0x7   : > { %p129_p3 = scmp.ne.s32.totalorder %s5847_s16, %s5843_s15  ;;  %p130_p4 = scmp.eq.s32.totalorder %s4774_s20, 3 }
   0x8   : > { %s5931_s24 = scalar_select %p111_p1, %s5851_s17, %s113_s22  }
   0x9   : > { %p5933_p5 = por %p124_p2, %p123_p0  ;;  %p5937_p6 = por %p130_p4, %p129_p3 }
   0xa   : > { %p4777_p7 = scmp.ge.s32.totalorder %s5855_s18, 1  ;;  %p167_p8 = scmp.lt.s32.totalorder %s5855_s18, 5 }
   0xc   : > { %p168_p9 = pnand %p4777_p7, %p167_p8 }
   0xd   : > { %s4778_s27 = sshll.u32 (!%p168_p9), %s5916_s19, 2  ;;  %v5857_v0 = vmov (!%p168_p9), 0   ;;  %vm204_vm0 = vcmask (!%p168_p9), 572416   ;;  %s5858_s6 = smov (!%p168_p9), 19   ;;  %vm266_vm1 = vcmask (!%p168_p9), 1047704   ;;  %vm255_vm2 = vcmask (!%p168_p9), 154624  }
   0xe   : > { %171 = sbr.rel (%p168_p9) target bundleno = 2003 (0x7d3), region = 36  ;;  %p195_p10 = scmp.lt.s32.totalorder (!%p168_p9), %s4778_s27, 15  ;;  %202 = vst [vmem:[#allocation2] sm:$0xff] (!%p168_p9), %v5857_v0  ;;  %206 = vst [vmem:[#allocation2 + $0x18] sm:$0xff] (!%p168_p9), %v5857_v0  ;;  %384 = vmatprep.mubr.bf16.mxu1 (!%p168_p9), %v5857_v0  ;;  %648 = vmatprep.mubr.bf16.mxu0 (!%p168_p9), %v5857_v0  ;;  %vm269_vm3 = vcmask (!%p168_p9), 416768   ;;  %vm334_vm4 = vcmask (!%p168_p9), 1039360  }
   0xf   : > { %205 = vst.msk [vmem:[#allocation2 + $0x10] sm:$0xff] (!%p168_p9), %vm204_vm0, %v5857_v0  ;;  %208 = vst.msk [vmem:[#allocation2 + $0x28] sm:$0xff] (!%p168_p9), %vm204_vm0, %v5857_v0  ;;  %5729 = vset.pattern.permute.xlu0 (!%p168_p9), %v5857_v0  ;;  %5730 = vset.pattern.permute.xlu1 (!%p168_p9), %v5857_v0  ;;  %s5859_s7 = smov (!%p168_p9), 127   ;;  %s5860_s8 = smov (!%p168_p9), 126   ;;  %v5739_v32 = vld [vmem:[%s6969_s1 + $0x10] sm:$0xff] (!%p168_p9)   ;;  %v1678_v33 = vld [vmem:[%s6970_s2] sm:$0xff] (!%p168_p9) }
  0x10   : > { %s5861_s9 = smov (!%p168_p9), 110   ;;  %s5862_s10 = smov (!%p168_p9), 109   ;;  %v1679_v34 = vld [vmem:[%s6970_s2 + $0x8] sm:$0xff] (!%p168_p9)  ;;  %vm345_vm5 = vcmask (!%p168_p9), 261120   ;;  %vm599_vm6 = vcmask (!%p168_p9), 1031168   ;;  %v1680_v39 = vld [vmem:[%s6970_s2 + $0x10] sm:$0xff] (!%p168_p9) }
  0x11   : > { %s5863_s11 = smov (!%p168_p9), 108   ;;  %s5864_s12 = smov (!%p168_p9), 92   ;;  %v1681_v40 = vld [vmem:[%s6970_s2 + $0x18] sm:$0xff] (!%p168_p9)  ;;  %v6116_v48 = vld [vmem:[%s6969_s1 + $0x20] sm:$0xff] (!%p168_p9)   ;;  %vm757_vm7 = vcmask (!%p168_p9), 900096   ;;  %v6135_v56 = vld [vmem:[%s6969_s1 + $0x28] sm:$0xff] (!%p168_p9)  }
  0x12   : > { %s5865_s13 = smov (!%p168_p9), 91   ;;  %s5866_s14 = smov (!%p168_p9), 90   ;;  %v5740_v44 = vld [vmem:[%s6969_s1 + $0x18] sm:$0xff] (!%p168_p9)   ;;  %v5743_v60 = vld [vmem:[%s6969_s1] sm:$0xff] (!%p168_p9)   ;;  %vm915_vm8 = vcmask (!%p168_p9), 891904   ;;  %vm1073_vm9 = vcmask (!%p168_p9), 883712  }
  0x13   : > { %vm1231_vm10 = vcmask (!%p168_p9), 752640   ;;  %vm1389_vm11 = vcmask (!%p168_p9), 744448   ;;  %vm1547_vm12 = vcmask (!%p168_p9), 736256   ;;  %s5677_s30 = smul.u32 (!%p168_p9), 1536, %s5916_s19 }
  0x15   : > { %s6980_s27 = smov (!%p195_p10, %s4778_s27), 15 }
  0x16   : > { %s5676_s28 = smul.u32 12, %s6980_s27  ;;  %s191_s27 = sand.u32 1, %s5847_s16  }
  0x17   : > { %s6927_s19 = scalar_lea.sflag [#allocation4], %s191_s27 }
  0x18   : > { %s199_s5 = scalar_lea.vmem %s6968_s0, %s5676_s28  ;;  %s5675_s28 = smul.u32 96, %s191_s27 }
  0x19   : > { %v5731_v1 = vld [vmem:[%s199_s5 + $0x8] ss:$12 sps:$4 sm:$0xff]   ;;  %v5732_v2 = vld [vmem:[%s199_s5] ss:$12 sps:$4 sm:$0xff]   ;;  %v5734_v3 = vld [vmem:[%s199_s5 + $0x4] ss:$12 sps:$4 sm:$0xff]  }
  0x1a   : > { %247 = vrot.lane.b32.xlu1 %v5731_v1, %s5858_s6  ;;  %243 = vrot.lane.b32.xlu0 %v5732_v2, %s5858_s6  ;;  %v5735_v4 = vld [vmem:[%s199_s5 + $0x18] ss:$12 sps:$4 sm:$0xff]   ;;  %v5737_v5 = vld [vmem:[%s199_s5 + $0x20] ss:$12 sps:$4 sm:$0xff]   ;;  %s6898_s29 = scalar_lea.vmem [#allocation3], %s5675_s28 }
  0x1b   : > { %v5738_v6 = vld [vmem:[%s199_s5 + $0x1c] ss:$12 sps:$4 sm:$0xff]   ;;  %v5744_v1 = vld [vmem:[%s6969_s1 + $0x30] sm:$0xff]   ;;  %s4712_s5 = sshll.u32 %s6898_s29, 4  ;;  %s6919_s5 = int_to_ptr.vmem [resolvable:$true] %s4712_s5 }
  0x1e   : > { %249 = vrot.lane.b32.xlu1 %v5735_v4, %s5858_s6  ;;  %245 = vrot.lane.b32.xlu0 %v5734_v3, %s5858_s6 }
  0x22   : > { %253 = vrot.lane.b32.xlu1 %v5737_v5, %s5858_s6  ;;  %251 = vrot.lane.b32.xlu0 %v5738_v6, %s5858_s6  ;;  %v5745_v6 = vld [vmem:[%s6969_s1 + $0x8] sm:$0xff]  }
  0x8c   : > { %v248_v7 = vpop.permute.xlu1 %247  ;;  %v244_v8 = vpop.permute.xlu0 %243 }
  0x8d   : > { %267 = vst.msk [vmem:[#allocation2] sm:$0xff] %vm266_vm1, %v244_v8 }
  0x90   : > { %v250_v9 = vpop.permute.xlu1 %249  ;;  %v246_v10 = vpop.permute.xlu0 %245 }
  0x91   : > { %271 = vst.msk [vmem:[#allocation2 + $0x18] sm:$0xff] %vm266_vm1, %v250_v9  ;;  %v257_v11 = vsel %vm255_vm2, %v246_v10, %v248_v7  ;;  %v5972_v16 = vsel %vm255_vm2, %v244_v8, %v246_v10  ;;  %v5746_v10 = vld [vmem:[%s6969_s1 + $0x38] sm:$0xff]  }
  0x92   : > { %270 = vst.msk [vmem:[#allocation2 + $0x10] sm:$0xff] %vm269_vm3, %v257_v11 }
  0x94   : > { %v254_v12 = vpop.permute.xlu1 %253  ;;  %v252_v13 = vpop.permute.xlu0 %251  ;;  %v5965_v14 = vld [vmem:[#allocation2] sm:$0xff] }
  0x95   : > { %v259_v15 = vsel %vm255_vm2, %v252_v13, %v254_v12  ;;  %322 = vrot.lane.b32.xlu0 %v5965_v14, %s5859_s7  ;;  %v5981_v18 = vsel %vm255_vm2, %v250_v9, %v252_v13 }
  0x96   : > { %273 = vst.msk [vmem:[#allocation2 + $0x28] sm:$0xff] %vm269_vm3, %v259_v15 }
  0x98   : > { %v5989_v20 = vld [vmem:[#allocation2 + $0x18] sm:$0xff] }
  0x99   : > { %v5974_v17 = vld [vmem:[#allocation2 + $0x10] sm:$0xff]  ;;  %324 = vrot.lane.b32.xlu0 %v5972_v16, %s5859_s7 }
  0x9a   : > { %326 = vrot.lane.b32.xlu1 %v5974_v17, %s5859_s7 }
  0x9d   : > { %v5983_v19 = vld [vmem:[#allocation2 + $0x28] sm:$0xff] }
  0x9e   : > { %332 = vrot.lane.b32.xlu0 %v5983_v19, %s5859_s7  ;;  %330 = vrot.lane.b32.xlu1 %v5981_v18, %s5859_s7 }
  0xa2   : > { %587 = vrot.lane.b32.xlu0 %v5965_v14, %s5860_s8  ;;  %328 = vrot.lane.b32.xlu1 %v5989_v20, %s5859_s7 }
  0xa6   : > { %589 = vrot.lane.b32.xlu0 %v5972_v16, %s5860_s8  ;;  %591 = vrot.lane.b32.xlu1 %v5974_v17, %s5860_s8 }
  0xaa   : > { %597 = vrot.lane.b32.xlu0 %v5983_v19, %s5860_s8  ;;  %595 = vrot.lane.b32.xlu1 %v5981_v18, %s5860_s8 }
  0xae   : > { %745 = vrot.lane.b32.xlu0 %v5965_v14, %s5861_s9  ;;  %593 = vrot.lane.b32.xlu1 %v5989_v20, %s5860_s8 }
  0xb2   : > { %747 = vrot.lane.b32.xlu0 %v5972_v16, %s5861_s9  ;;  %749 = vrot.lane.b32.xlu1 %v5974_v17, %s5861_s9 }
  0xb6   : > { %755 = vrot.lane.b32.xlu0 %v5983_v19, %s5861_s9  ;;  %753 = vrot.lane.b32.xlu1 %v5981_v18, %s5861_s9 }
  0xba   : > { %903 = vrot.lane.b32.xlu0 %v5965_v14, %s5862_s10  ;;  %751 = vrot.lane.b32.xlu1 %v5989_v20, %s5861_s9 }
  0xbe   : > { %905 = vrot.lane.b32.xlu0 %v5972_v16, %s5862_s10  ;;  %907 = vrot.lane.b32.xlu1 %v5974_v17, %s5862_s10 }
  0xc2   : > { %913 = vrot.lane.b32.xlu0 %v5983_v19, %s5862_s10  ;;  %911 = vrot.lane.b32.xlu1 %v5981_v18, %s5862_s10 }
  0xc6   : > { %1061 = vrot.lane.b32.xlu0 %v5965_v14, %s5863_s11  ;;  %909 = vrot.lane.b32.xlu1 %v5989_v20, %s5862_s10 }
  0xca   : > { %1063 = vrot.lane.b32.xlu0 %v5972_v16, %s5863_s11  ;;  %1065 = vrot.lane.b32.xlu1 %v5974_v17, %s5863_s11 }
  0xce   : > { %1071 = vrot.lane.b32.xlu0 %v5983_v19, %s5863_s11  ;;  %1069 = vrot.lane.b32.xlu1 %v5981_v18, %s5863_s11 }
  0xd2   : > { %1219 = vrot.lane.b32.xlu0 %v5965_v14, %s5864_s12  ;;  %1067 = vrot.lane.b32.xlu1 %v5989_v20, %s5863_s11 }
  0xd6   : > { %1221 = vrot.lane.b32.xlu0 %v5972_v16, %s5864_s12  ;;  %1223 = vrot.lane.b32.xlu1 %v5974_v17, %s5864_s12 }
  0xda   : > { %1229 = vrot.lane.b32.xlu0 %v5983_v19, %s5864_s12  ;;  %1227 = vrot.lane.b32.xlu1 %v5981_v18, %s5864_s12 }
  0xde   : > { %1377 = vrot.lane.b32.xlu0 %v5965_v14, %s5865_s13  ;;  %1225 = vrot.lane.b32.xlu1 %v5989_v20, %s5864_s12 }
  0xe2   : > { %1379 = vrot.lane.b32.xlu0 %v5972_v16, %s5865_s13  ;;  %1381 = vrot.lane.b32.xlu1 %v5974_v17, %s5865_s13 }
  0xe6   : > { %1387 = vrot.lane.b32.xlu0 %v5983_v19, %s5865_s13  ;;  %1385 = vrot.lane.b32.xlu1 %v5981_v18, %s5865_s13 }
  0xea   : > { %1535 = vrot.lane.b32.xlu0 %v5965_v14, %s5866_s14  ;;  %1383 = vrot.lane.b32.xlu1 %v5989_v20, %s5865_s13 }
  0xee   : > { %1537 = vrot.lane.b32.xlu0 %v5972_v16, %s5866_s14  ;;  %1539 = vrot.lane.b32.xlu1 %v5974_v17, %s5866_s14 }
  0xf2   : > { %1545 = vrot.lane.b32.xlu0 %v5983_v19, %s5866_s14  ;;  %1543 = vrot.lane.b32.xlu1 %v5981_v18, %s5866_s14 }
  0xf6   : > { %1541 = vrot.lane.b32.xlu1 %v5989_v20, %s5866_s14  ;;  %1684 = vperm.xlu0 %5729, %v1678_v33  }
  0xfa   : > { %1689 = vperm.xlu1 %5730, %v1679_v34   ;;  %1699 = vperm.xlu0 %5729, %v1681_v40  }
  0xfe   : > { %1694 = vperm.xlu1 %5730, %v1680_v39  }
 0x107   : > { %v323_v21 = vpop.permute.xlu0 %322 }
 0x10b   : > { %v325_v22 = vpop.permute.xlu0 %324 }
 0x10c   : > { %v327_v23 = vpop.permute.xlu1 %326  ;;  %v335_v25 = vsel %vm334_vm4, %v323_v21, %v325_v22 }
 0x10d   : > { %v336_v24 = vsel %vm334_vm4, %v325_v22, %v327_v23 }
 0x10e   : > { %352 = vmatprep.subr.bf16.mxu1 %v336_v24 }
 0x10f   : > { %353 = vmatpush1.bf16.msra.mxu1 %v335_v25  ;;  %v5748_v25 = vld [vmem:[%s6969_s1 + $0x48] sm:$0xff]  }
 0x110   : > { %v331_v26 = vpop.permute.xlu1 %330  ;;  %v333_v27 = vpop.permute.xlu0 %332 }
 0x111   : > { %v338_v28 = vsel %vm334_vm4, %v331_v26, %v333_v27 }
 0x112   : > { %354 = vmatprep.subr.bf16.mxu1 %v338_v28 }
 0x114   : > { %v329_v29 = vpop.permute.xlu1 %328  ;;  %v588_v30 = vpop.permute.xlu0 %587 }
 0x115   : > { %v337_v31 = vsel %vm334_vm4, %v329_v29, %v331_v26 }
 0x116   : > { %355 = vmatpush1.bf16.msra.mxu1 %v337_v31 }
 0x117   : > { %5171 = vmatprep.subr.bf16.mxu1 %v327_v23 }
 0x118   : > { %v6090_v35 = vpop.permute.xlu1 %591  ;;  %v590_v36 = vpop.permute.xlu0 %589 }
 0x119   : > { %4792 = vmatmul.mubr.msk.bf16.vlgmr.msra.gmra.mrb[0].mxu1 %vm345_vm5, %v5739_v32  ;;  %v601_v37 = vsel %vm599_vm6, %v590_v36, %v6090_v35  ;;  %v600_v38 = vsel %vm599_vm6, %v588_v30, %v590_v36  ;;  %v5749_v30 = vld [vmem:[%s6969_s1 + $0x50] sm:$0xff]   ;;  %v5750_v36 = vld [vmem:[%s6969_s1 + $0x58] sm:$0xff]  }
 0x11a   : > { %5172 = vmatpush3.bf16.msra.mxu1 %v327_v23  ;;  %616 = vmatprep.subr.bf16.mxu0 %v601_v37 }
 0x11b   : > { %5173 = vmatprep.subr.bf16.mxu1 %v333_v27  ;;  %617 = vmatpush1.bf16.msra.mxu0 %v600_v38 }
 0x11c   : > { %v596_v41 = vpop.permute.xlu1 %595  ;;  %v6102_v42 = vpop.permute.xlu0 %597  ;;  %394 = vmatprep.mubr.bf16.mxu1 %v5857_v0 }
 0x11d   : > { %v603_v43 = vsel %vm599_vm6, %v596_v41, %v6102_v42 }
 0x11e   : > { %5174 = vmatpush3.bf16.msra.mxu1 %v333_v27  ;;  %618 = vmatprep.subr.bf16.mxu0 %v603_v43 }
 0x11f   : > { %470 = vmatprep.subr.bf16.mxu1 %v5972_v16  ;;  %v5747_v16 = vld [vmem:[%s6969_s1 + $0x40] sm:$0xff]  }
 0x120   : > { %v594_v45 = vpop.permute.xlu1 %593  ;;  %v746_v46 = vpop.permute.xlu0 %745 }
 0x121   : > { %4793 = vmatmul.mubr.msk.bf16.gmra.mrb[4].mxu1 %vm345_vm5, %v5740_v44  ;;  %v602_v47 = vsel %vm599_vm6, %v594_v45, %v596_v41 }
 0x122   : > { %619 = vmatpush1.bf16.msra.mxu0 %v602_v47  ;;  %5175 = vmatprep.mubr.msk.bf16.mxu1 %vm345_vm5, %v5739_v32 }
 0x124   : > { %v6119_v49 = vpop.permute.xlu1 %749  ;;  %v748_v50 = vpop.permute.xlu0 %747 }
 0x125   : > { %4808 = vmatmul.mubr.msk.bf16.vlgmr.msra.gmra.mrb[0].mxu0 %vm345_vm5, %v6116_v48  ;;  %v759_v51 = vsel %vm757_vm7, %v748_v50, %v6119_v49  ;;  %v758_v52 = vsel %vm757_vm7, %v746_v46, %v748_v50 }
 0x126   : > { %774 = vmatprep.subr.bf16.mxu0 %v759_v51  ;;  %658 = vmatprep.mubr.bf16.mxu0 %v5857_v0  ;;  %v5753_v51 = vld [vmem:[%s6969_s1 + $0x70] sm:$0xff]  }
 0x127   : > { %775 = vmatpush1.bf16.msra.mxu0 %v758_v52 }
 0x128   : > { %v754_v53 = vpop.permute.xlu1 %753  ;;  %v6127_v54 = vpop.permute.xlu0 %755 }
 0x129   : > { %5176 = vmatmul.mubr.msk.bf16.vlgmr.msra.gmra.mrb[8].mxu1 %vm345_vm5, %v5740_v44  ;;  %v761_v55 = vsel %vm757_vm7, %v754_v53, %v6127_v54 }
 0x12a   : > { %471 = vmatpush1.bf16.msra.mxu1 %v5965_v14  ;;  %776 = vmatprep.subr.bf16.mxu0 %v761_v55 }
 0x12b   : > { %472 = vmatprep.subr.bf16.mxu1 %v5981_v18  ;;  %502 = vmatprep.mubr.bf16.mxu1 %v5857_v0 }
 0x12c   : > { %v752_v57 = vpop.permute.xlu1 %751  ;;  %v904_v58 = vpop.permute.xlu0 %903 }
 0x12d   : > { %v760_v59 = vsel %vm757_vm7, %v752_v57, %v754_v53  ;;  %4809 = vmatmul.mubr.msk.bf16.gmra.mrb[4].mxu0 %vm345_vm5, %v6135_v56  ;;  %v5754_v57 = vld [vmem:[%s6969_s1 + $0x78] sm:$0xff]  }
 0x12e   : > { %473 = vmatpush1.bf16.msra.mxu1 %v5989_v20  ;;  %777 = vmatpush1.bf16.msra.mxu0 %v760_v59  ;;  %v5756_v59 = vld [vmem:[%s6969_s1 + $0x88] sm:$0xff]  }
 0x12f   : > { %5179 = vmatprep.subr.bf16.mxu1 %v5974_v17  ;;  %806 = vmatprep.mubr.bf16.mxu0 %v5857_v0 }
 0x130   : > { %v6149_v61 = vpop.permute.xlu1 %907  ;;  %v906_v62 = vpop.permute.xlu0 %905 }
 0x131   : > { %4798 = vmatmul.mubr.msk.bf16.vlgmr.msra.gmra.mrb[0].mxu1 %vm345_vm5, %v5743_v60  ;;  %v917_v63 = vsel %vm915_vm8, %v906_v62, %v6149_v61  ;;  %v916_v4 = vsel %vm915_vm8, %v904_v58, %v906_v62  ;;  %v5755_v58 = vld [vmem:[%s6969_s1 + $0x80] sm:$0xff]  }
 0x132   : > { %5180 = vmatpush3.bf16.msra.mxu1 %v5974_v17  ;;  %932 = vmatprep.subr.bf16.mxu0 %v917_v63 }
 0x133   : > { %5181 = vmatprep.subr.bf16.mxu1 %v5983_v19  ;;  %512 = vmatprep.mubr.bf16.mxu1 %v5857_v0 }
 0x134   : > { %v912_v2 = vpop.permute.xlu1 %911  ;;  %v6160_v3 = vpop.permute.xlu0 %913 }
 0x135   : > { %4818 = vmatmul.mubr.msk.bf16.vlgmr.msra.gmra.mrb[0].mxu0 %vm345_vm5, %v5744_v1  ;;  %v919_v5 = vsel %vm915_vm8, %v912_v2, %v6160_v3 }
 0x136   : > { %5182 = vmatpush3.bf16.msra.mxu1 %v5983_v19  ;;  %933 = vmatpush1.bf16.msra.mxu0 %v916_v4 }
 0x137   : > { %5187 = vmatprep.subr.bf16.mxu1 %v6090_v35  ;;  %934 = vmatprep.subr.bf16.mxu0 %v919_v5  ;;  %v276_v5 = vlaneseq }
 0x138   : > { %v910_v7 = vpop.permute.xlu1 %909  ;;  %v1062_v8 = vpop.permute.xlu0 %1061  ;;  %816 = vmatprep.mubr.bf16.mxu0 %v5857_v0 }
 0x139   : > { %v918_v9 = vsel %vm915_vm8, %v910_v7, %v912_v2  ;;  %4799 = vmatmul.mubr.msk.bf16.gmra.mrb[4].mxu1 %vm345_vm5, %v5745_v6 }
 0x13a   : > { %935 = vmatpush1.bf16.msra.mxu0 %v918_v9  ;;  %5183 = vmatprep.mubr.msk.bf16.mxu1 %vm345_vm5, %v5743_v60 }
 0x13c   : > { %v6178_v11 = vpop.permute.xlu1 %1065  ;;  %v1064_v12 = vpop.permute.xlu0 %1063 }
 0x13d   : > { %4819 = vmatmul.mubr.msk.bf16.gmra.mrb[4].mxu0 %vm345_vm5, %v5746_v10  ;;  %v1075_v13 = vsel %vm1073_vm9, %v1064_v12, %v6178_v11  ;;  %v1074_v19 = vsel %vm1073_vm9, %v1062_v8, %v1064_v12 }
 0x13e   : > { %1090 = vmatprep.subr.bf16.mxu0 %v1075_v13  ;;  %964 = vmatprep.mubr.bf16.mxu0 %v5857_v0 }
 0x140   : > { %v1070_v14 = vpop.permute.xlu1 %1069  ;;  %v6184_v15 = vpop.permute.xlu0 %1071 }
 0x141   : > { %5184 = vmatmul.mubr.msk.bf16.vlgmr.msra.gmra.mrb[8].mxu1 %vm345_vm5, %v5745_v6  ;;  %v1077_v20 = vsel %vm1073_vm9, %v1070_v14, %v6184_v15  ;;  %v277_v6 = vshrl.u32 %v276_v5, 7 }
 0x142   : > { %5188 = vmatpush3.bf16.msra.mxu1 %v6090_v35  ;;  %5191 = vmatprep.mubr.msk.bf16.mxu1 %vm345_vm5, %v6116_v48  ;;  %v5752_v48 = vld [vmem:[%s6969_s1 + $0x68] sm:$0xff]  }
 0x143   : > { %5189 = vmatprep.subr.bf16.mxu1 %v6102_v42 }
 0x144   : > { %v1068_v17 = vpop.permute.xlu1 %1067  ;;  %v1220_v18 = vpop.permute.xlu0 %1219 }
 0x145   : > { %4828 = vmatmul.mubr.msk.bf16.vlgmr.msra.gmra.mrb[0].mxu0 %vm345_vm5, %v5747_v16  ;;  %v1076_v23 = vsel %vm1073_vm9, %v1068_v17, %v1070_v14 }
 0x146   : > { %5190 = vmatpush3.bf16.msra.mxu1 %v6102_v42  ;;  %1091 = vmatpush1.bf16.msra.mxu0 %v1074_v19  ;;  %v5751_v42 = vld [vmem:[%s6969_s1 + $0x60] sm:$0xff]  }
 0x147   : > { %5195 = vmatprep.subr.bf16.mxu1 %v6119_v49  ;;  %1092 = vmatprep.subr.bf16.mxu0 %v1077_v20 }
 0x148   : > { %v6200_v21 = vpop.permute.xlu1 %1223  ;;  %v1222_v22 = vpop.permute.xlu0 %1221  ;;  %974 = vmatprep.mubr.bf16.mxu0 %v5857_v0 }
 0x149   : > { %v1233_v24 = vsel %vm1231_vm10, %v1222_v22, %v6200_v21  ;;  %v1232_v33 = vsel %vm1231_vm10, %v1220_v18, %v1222_v22 }
 0x14a   : > { %1093 = vmatpush1.bf16.msra.mxu0 %v1076_v23 }
 0x14b   : > { %1248 = vmatprep.subr.bf16.mxu0 %v1233_v24 }
 0x14c   : > { %v1228_v26 = vpop.permute.xlu1 %1227  ;;  %v6209_v27 = vpop.permute.xlu0 %1229 }
 0x14d   : > { %5192 = vmatmul.mubr.msk.bf16.vlgmr.msra.gmra.mrb[8].mxu1 %vm345_vm5, %v6135_v56  ;;  %4829 = vmatmul.mubr.msk.bf16.gmra.mrb[4].mxu0 %vm345_vm5, %v5748_v25  ;;  %v1235_v34 = vsel %vm1231_vm10, %v1228_v26, %v6209_v27 }
 0x14e   : > { %5196 = vmatpush3.bf16.msra.mxu1 %v6119_v49  ;;  %1122 = vmatprep.mubr.bf16.mxu0 %v5857_v0 }
 0x14f   : > { %5197 = vmatprep.subr.bf16.mxu1 %v6127_v54  ;;  %5199 = vmatprep.mubr.msk.bf16.mxu1 %vm345_vm5, %v5744_v1 }
 0x150   : > { %v1226_v28 = vpop.permute.xlu1 %1225  ;;  %v1378_v29 = vpop.permute.xlu0 %1377 }
 0x151   : > { %v1234_v35 = vsel %vm1231_vm10, %v1226_v28, %v1228_v26 }
 0x152   : > { %5198 = vmatpush3.bf16.msra.mxu1 %v6127_v54 }
 0x153   : > { %5203 = vmatprep.subr.bf16.mxu1 %v6149_v61 }
 0x154   : > { %v6223_v31 = vpop.permute.xlu1 %1381  ;;  %v1380_v32 = vpop.permute.xlu0 %1379 }
 0x155   : > { %4838 = vmatmul.mubr.msk.bf16.vlgmr.msra.gmra.mrb[0].mxu0 %vm345_vm5, %v5749_v30  ;;  %v1391_v37 = vsel %vm1389_vm11, %v1380_v32, %v6223_v31  ;;  %v1390_v43 = vsel %vm1389_vm11, %v1378_v29, %v1380_v32 }
 0x156   : > { %1249 = vmatpush1.bf16.msra.mxu0 %v1232_v33  ;;  %1132 = vmatprep.mubr.bf16.mxu0 %v5857_v0 }
 0x157   : > { %1250 = vmatprep.subr.bf16.mxu0 %v1235_v34 }
 0x158   : > { %v1386_v38 = vpop.permute.xlu1 %1385  ;;  %v1388_v39 = vpop.permute.xlu0 %1387 }
 0x159   : > { %5200 = vmatmul.mubr.msk.bf16.vlgmr.msra.gmra.mrb[8].mxu1 %vm345_vm5, %v5746_v10  ;;  %v1393_v44 = vsel %vm1389_vm11, %v1386_v38, %v1388_v39 }
 0x15a   : > { %5204 = vmatpush3.bf16.msra.mxu1 %v6149_v61  ;;  %1251 = vmatpush1.bf16.msra.mxu0 %v1234_v35 }
 0x15b   : > { %5205 = vmatprep.subr.bf16.mxu1 %v6160_v3  ;;  %1406 = vmatprep.subr.bf16.mxu0 %v1391_v37 }
 0x15c   : > { %5207 = vmatprep.mubr.msk.bf16.mxu1 %vm345_vm5, %v5747_v16  ;;  %v1384_v40 = vpop.permute.xlu1 %1383  ;;  %v1536_v41 = vpop.permute.xlu0 %1535  ;;  %v282_v16 = vsub.s32 1, %v277_v6 }
 0x15d   : > { %4839 = vmatmul.mubr.msk.bf16.gmra.mrb[4].mxu0 %vm345_vm5, %v5750_v36  ;;  %v1392_v47 = vsel %vm1389_vm11, %v1384_v40, %v1386_v38 }
 0x15e   : > { %5206 = vmatpush3.bf16.msra.mxu1 %v6160_v3  ;;  %1280 = vmatprep.mubr.bf16.mxu0 %v5857_v0 }
 0x15f   : > { %5211 = vmatprep.subr.bf16.mxu1 %v6178_v11 }
 0x160   : > { %v1540_v45 = vpop.permute.xlu1 %1539  ;;  %v1538_v46 = vpop.permute.xlu0 %1537 }
 0x161   : > { %v1549_v49 = vsel %vm1547_vm12, %v1538_v46, %v1540_v45  ;;  %v1548_v53 = vsel %vm1547_vm12, %v1536_v41, %v1538_v46 }
 0x164   : > { %v1544_v50 = vpop.permute.xlu1 %1543  ;;  %v1546_v52 = vpop.permute.xlu0 %1545 }
 0x165   : > { %5208 = vmatmul.mubr.msk.bf16.vlgmr.msra.gmra.mrb[8].mxu1 %vm345_vm5, %v5748_v25  ;;  %4848 = vmatmul.mubr.msk.bf16.vlgmr.msra.gmra.mrb[0].mxu0 %vm345_vm5, %v5751_v42  ;;  %v1551_v55 = vsel %vm1547_vm12, %v1544_v50, %v1546_v52 }
 0x166   : > { %5212 = vmatpush3.bf16.msra.mxu1 %v6178_v11  ;;  %1407 = vmatpush1.bf16.msra.mxu0 %v1390_v43  ;;  %v278_v11 = vsub.s32 0, %v277_v6 }
 0x167   : > { %5213 = vmatprep.subr.bf16.mxu1 %v6184_v15  ;;  %1408 = vmatprep.subr.bf16.mxu0 %v1393_v44 }
 0x168   : > { %1290 = vmatprep.mubr.bf16.mxu0 %v5857_v0  ;;  %5215 = vmatprep.mubr.msk.bf16.mxu1 %vm345_vm5, %v5749_v30  ;;  %v1542_v54 = vpop.permute.xlu1 %1541 }
 0x169   : > { %v1550_v56 = vsel %vm1547_vm12, %v1542_v54, %v1544_v50 }
 0x16a   : > { %5214 = vmatpush3.bf16.msra.mxu1 %v6184_v15  ;;  %1409 = vmatpush1.bf16.msra.mxu0 %v1392_v47  ;;  %v274_v15 = vld [vmem:[%s6971_s3] sm:$0x7] }
 0x16b   : > { %5219 = vmatprep.subr.bf16.mxu1 %v6200_v21  ;;  %1564 = vmatprep.subr.bf16.mxu0 %v1549_v49  ;;  %v6303_v24 = vrot.slane %v274_v15, %v278_v11 }
 0x16d   : > { %4849 = vmatmul.mubr.msk.bf16.gmra.mrb[4].mxu0 %vm345_vm5, %v5752_v48 }
 0x16e   : > { %1438 = vmatprep.mubr.bf16.mxu0 %v5857_v0 }
 0x171   : > { %5216 = vmatmul.mubr.msk.bf16.vlgmr.msra.gmra.mrb[8].mxu1 %vm345_vm5, %v5750_v36 }
 0x172   : > { %5220 = vmatpush3.bf16.msra.mxu1 %v6200_v21  ;;  %5223 = vmatprep.mubr.msk.bf16.mxu1 %vm345_vm5, %v5751_v42 }
 0x173   : > { %5221 = vmatprep.subr.bf16.mxu1 %v6209_v27 }
 0x175   : > { %4858 = vmatmul.mubr.msk.bf16.vlgmr.msra.gmra.mrb[0].mxu0 %vm345_vm5, %v5753_v51  ;;  %v1685_v8 = vpop.permute.xlu0 %1684 }
 0x176   : > { %5222 = vmatpush3.bf16.msra.mxu1 %v6209_v27  ;;  %1565 = vmatpush1.bf16.msra.mxu0 %v1548_v53  ;;  %v6305_v27 = vrot.slane %v274_v15, %v282_v16  ;;  %v286_v53 = vsub.s32 2, %v277_v6 }
 0x177   : > { %5227 = vmatprep.subr.bf16.mxu1 %v6223_v31  ;;  %1566 = vmatprep.subr.bf16.mxu0 %v1551_v55 }
 0x178   : > { %1448 = vmatprep.mubr.bf16.mxu0 %v5857_v0 }
 0x179   : > { %v1690_v14 = vpop.permute.xlu1 %1689  ;;  %v1700_v38 = vpop.permute.xlu0 %1699 }
 0x17a   : > { %1567 = vmatpush1.bf16.msra.mxu0 %v1550_v56 }
 0x17d   : > { %5224 = vmatmul.mubr.msk.bf16.vlgmr.msra.gmra.mrb[8].mxu1 %vm345_vm5, %v5752_v48  ;;  %4859 = vmatmul.mubr.msk.bf16.gmra.mrb[4].mxu0 %vm345_vm5, %v5754_v57 }
 0x17e   : > { %5228 = vmatpush3.bf16.msra.mxu1 %v6223_v31  ;;  %1596 = vmatprep.mubr.bf16.mxu0 %v5857_v0  ;;  %v1695_v31 = vpop.permute.xlu1 %1694 }
 0x17f   : > { %5229 = vmatprep.subr.bf16.mxu1 %v1388_v39  ;;  %5231 = vmatprep.mubr.msk.bf16.mxu1 %vm345_vm5, %v5753_v51 }
 0x182   : > { %5230 = vmatpush3.bf16.msra.mxu1 %v1388_v39 }
 0x183   : > { %5235 = vmatprep.subr.bf16.mxu1 %v1540_v45 }
 0x185   : > { %4868 = vmatmul.mubr.msk.bf16.vlgmr.msra.gmra.mrb[0].mxu0 %vm345_vm5, %v5755_v58 }
 0x186   : > { %1606 = vmatprep.mubr.bf16.mxu0 %v5857_v0 }
 0x189   : > { %5232 = vmatmul.mubr.msk.bf16.vlgmr.msra.gmra.mrb[8].mxu1 %vm345_vm5, %v5754_v57 }
 0x18a   : > { %5236 = vmatpush3.bf16.msra.mxu1 %v1540_v45  ;;  %5239 = vmatprep.mubr.msk.bf16.mxu1 %vm345_vm5, %v5755_v58 }
 0x18b   : > { %5237 = vmatprep.subr.bf16.mxu1 %v1546_v52 }
 0x18d   : > { %4869 = vmatmul.mubr.msk.bf16.gmra.mrb[4].mxu0 %vm345_vm5, %v5756_v59 }
 0x18e   : > { %5238 = vmatpush3.bf16.msra.mxu1 %v1546_v52  ;;  %3350 = vmatprep.mubr.bf16.mxu0 %v5857_v0 }
 0x195   : > { %5240 = vmatmul.mubr.msk.bf16.vlgmr.msra.gmra.mrb[8].mxu1 %vm345_vm5, %v5756_v59 }
 0x196   : > { %1870 = vmatprep.mubr.bf16.mxu1 %v5857_v0 }
 0x204   : > { %v504_v60 = vpop.f32.mrb[0].mxu1 }
 0x205   : > { %v506_v61 = vpop.f32.mrb[1].mxu1 }
 0x206   : > { %v508_v62 = vpop.f32.mrb[2].mxu1 }
 0x207   : > { %v510_v63 = vpop.f32.mrb[3].mxu1 }
 0x20c   : > { %v514_v1 = vpop.f32.mrb[4].mxu1 }
 0x20d   : > { %v516_v2 = vpop.f32.mrb[5].mxu1 }
 0x20e   : > { %v518_v3 = vpop.f32.mrb[6].mxu1 }
 0x20f   : > { %v520_v4 = vpop.f32.mrb[7].mxu1 }
 0x258   : > { %v1598_v7 = vpop.f32.mrb[0].mxu0 }
 0x259   : > { %v5387_v9 = vadd.f32 %v1598_v7, %v504_v60  ;;  %v1600_v10 = vpop.f32.mrb[1].mxu0 }
 0x25a   : > { %v5388_v12 = vadd.f32 %v1600_v10, %v506_v61  ;;  %v1602_v13 = vpop.f32.mrb[2].mxu0 }
 0x25b   : > { %v5389_v17 = vadd.f32 %v1602_v13, %v508_v62  ;;  %v1702_v18 = vadd.f32 %v5387_v9, %v1685_v8  ;;  %v1604_v19 = vpop.f32.mrb[3].mxu0 }
 0x25c   : > { %v1703_v20 = vadd.f32 %v5388_v12, %v1685_v8  ;;  %v5390_v21 = vadd.f32 %v1604_v19, %v510_v63 }
 0x25d   : > { %v1714_v22 = vmax.f32 %v1702_v18, 0.0  ;;  %v1705_v23 = vadd.f32 %v5389_v17, %v1690_v14 }
 0x25e   : > { %v1715_v25 = vmax.f32 %v1703_v20, 0.0  ;;  %v1706_v26 = vadd.f32 %v5390_v21, %v1690_v14 }
 0x25f   : > { %v1717_v28 = vmax.f32 %v1705_v23, 0.0  ;;  %v1726_v34 = vmul.f32 %v1714_v22, %v6303_v24 }
 0x260   : > { %v1718_v29 = vmax.f32 %v1706_v26, 0.0  ;;  %v1608_v30 = vpop.f32.mrb[4].mxu0  ;;  %v1727_v39 = vmul.f32 %v1715_v25, %v6305_v27 }
 0x261   : > { %v5391_v32 = vadd.f32 %v1608_v30, %v514_v1  ;;  %v1610_v33 = vpop.f32.mrb[5].mxu0  ;;  %v1729_v35 = vmul.f32 %v1717_v28, %v6303_v24  ;;  %v6317_v1 = vrot.slane %v274_v15, %v286_v53 }
 0x262   : > { %v5392_v36 = vadd.f32 %v1610_v33, %v516_v2  ;;  %v1612_v37 = vpop.f32.mrb[6].mxu0  ;;  %v1730_v40 = vmul.f32 %v1718_v29, %v6305_v27  ;;  %v4962_v33 = vld [vmem:[%s6970_s2 + $0x20] sm:$0xff] }
 0x263   : > { %v1708_v41 = vadd.f32 %v5391_v32, %v1695_v31  ;;  %v5393_v42 = vadd.f32 %v1612_v37, %v518_v3  ;;  %v1614_v43 = vpop.f32.mrb[7].mxu0  ;;  %v1738_v44 = vpack.c.bf16 %v1729_v35, %v1726_v34  ;;  %v4963_v34 = vld [vmem:[%s6970_s2 + $0x28] sm:$0xff]  ;;  %v4964_v35 = vld [vmem:[%s6970_s2 + $0x30] sm:$0xff] }
 0x264   : > { %v1709_v45 = vadd.f32 %v5392_v36, %v1695_v31  ;;  %v5394_v46 = vadd.f32 %v1614_v43, %v520_v4  ;;  %v1739_v47 = vpack.c.bf16 %v1730_v40, %v1727_v39  ;;  %v4965_v36 = vld [vmem:[%s6970_s2 + $0x38] sm:$0xff] }
 0x265   : > { %v1720_v48 = vmax.f32 %v1708_v41, 0.0  ;;  %v1711_v49 = vadd.f32 %v5393_v42, %v1700_v38  ;;  %1750 = vrot.lane.b32.xlu1 %v1738_v44, %s5858_s6 }
 0x266   : > { %v1721_v50 = vmax.f32 %v1709_v45, 0.0  ;;  %v1712_v51 = vadd.f32 %v5394_v46, %v1700_v38  ;;  %1752 = vrot.lane.b32.xlu0 %v1739_v47, %s5858_s6  ;;  %v5757_v47 = vld [vmem:[%s6969_s1 + $0xa0] sm:$0xff]  }
 0x267   : > { %v1723_v52 = vmax.f32 %v1711_v49, 0.0  ;;  %v1732_v58 = vmul.f32 %v1720_v48, %v6303_v24  ;;  %v5758_v48 = vld [vmem:[%s6969_s1 + $0xa8] sm:$0xff]   ;;  %v5759_v49 = vld [vmem:[%s6969_s1 + $0x90] sm:$0xff]  }
 0x268   : > { %v1724_v54 = vmax.f32 %v1712_v51, 0.0  ;;  %v5241_v55 = vpop.f32.mrb[8].mxu1  ;;  %v1733_v62 = vmul.f32 %v1721_v50, %v6305_v27 }
 0x269   : > { %v1710_v56 = vadd.f32 %v5241_v55, %v1695_v31  ;;  %v1651_v57 = vpop.f32.mrb[9].mxu1  ;;  %v1735_v59 = vmul.f32 %v1723_v52, %v6303_v24  ;;  %v5760_v52 = vld [vmem:[%s6969_s1 + $0x98] sm:$0xff]  }
 0x26a   : > { %v1704_v60 = vadd.f32 %v1685_v8, %v1651_v57  ;;  %v5242_v61 = vpop.f32.mrb[10].mxu1  ;;  %v1736_v63 = vmul.f32 %v1724_v54, %v6305_v27 }
 0x26b   : > { %v1722_v2 = vmax.f32 %v1710_v56, 0.0  ;;  %v1713_v3 = vadd.f32 %v5242_v61, %v1700_v38  ;;  %v1654_v4 = vpop.f32.mrb[11].mxu1  ;;  %v1741_v5 = vpack.c.bf16 %v1735_v59, %v1732_v58  ;;  %v5761_v61 = vld [vmem:[%s6969_s1 + $0xb0] sm:$0xff]  }
 0x26c   : > { %v1716_v6 = vmax.f32 %v1704_v60, 0.0  ;;  %v1707_v7 = vadd.f32 %v1690_v14, %v1654_v4  ;;  %v1742_v9 = vpack.c.bf16 %v1736_v63, %v1733_v62 }
 0x26d   : > { %v1725_v10 = vmax.f32 %v1713_v3, 0.0  ;;  %1756 = vrot.lane.b32.xlu0 %v1741_v5, %s5858_s6  ;;  %v1734_v8 = vmul.f32 %v1722_v2, %v6317_v1  ;;  %v5762_v2 = vld [vmem:[%s6969_s1 + $0xb8] sm:$0xff]  }
 0x26e   : > { %v1719_v11 = vmax.f32 %v1707_v7, 0.0  ;;  %v1728_v13 = vmul.f32 %v1716_v6, %v6317_v1 }
 0x26f   : > { %v1737_v12 = vmul.f32 %v1725_v10, %v6317_v1 }
 0x270   : > { %v1731_v15 = vmul.f32 %v1719_v11, %v6317_v1 }
 0x271   : > { %v1743_v16 = vpack.c.bf16 %v1737_v12, %v1734_v8  ;;  %v5763_v8 = vld [vmem:[%s6969_s1 + $0xc0] sm:$0xff]  }
 0x272   : > { %v1740_v17 = vpack.c.bf16 %v1731_v15, %v1728_v13  ;;  %v5764_v15 = vld [vmem:[%s6969_s1 + $0xc8] sm:$0xff]  }
 0x273   : > { %1760 = vrot.lane.b32.xlu0 %v1743_v16, %s5858_s6 }
 0x274   : > { %1754 = vrot.lane.b32.xlu1 %v1740_v17, %s5858_s6 }
 0x278   : > { %1758 = vrot.lane.b32.xlu1 %v1742_v9, %s5858_s6 }
 0x2d7   : > { %v1751_v14 = vpop.permute.xlu1 %1750 }
 0x2d8   : > { %1772 = vst.msk [vmem:[#allocation2] sm:$0xff] %vm266_vm1, %v1751_v14  ;;  %v1753_v18 = vpop.permute.xlu0 %1752 }
 0x2d9   : > { %v6334_v21 = vsel %vm255_vm2, %v1751_v14, %v1753_v18 }
 0x2df   : > { %v1757_v19 = vpop.permute.xlu0 %1756  ;;  %v6328_v20 = vld [vmem:[#allocation2] sm:$0xff] }
 0x2e0   : > { %1775 = vst.msk [vmem:[#allocation2 + $0x18] sm:$0xff] %vm266_vm1, %v1757_v19  ;;  %1810 = vrot.lane.b32.xlu1 %v6328_v20, %s5859_s7 }
 0x2e4   : > { %1812 = vrot.lane.b32.xlu1 %v6334_v21, %s5859_s7 }
 0x2e5   : > { %v1761_v25 = vpop.permute.xlu0 %1760 }
 0x2e6   : > { %v1755_v22 = vpop.permute.xlu1 %1754 }
 0x2e7   : > { %v1763_v23 = vsel %vm255_vm2, %v1753_v18, %v1755_v22  ;;  %v6355_v32 = vld [vmem:[#allocation2 + $0x18] sm:$0xff] }
 0x2e8   : > { %1774 = vst.msk [vmem:[#allocation2 + $0x10] sm:$0xff] %vm269_vm3, %v1763_v23  ;;  %v5765_v23 = vld [vmem:[%s6969_s1 + $0xd0] sm:$0xff]  }
 0x2ea   : > { %v1759_v26 = vpop.permute.xlu1 %1758 }
 0x2eb   : > { %v1765_v28 = vsel %vm255_vm2, %v1759_v26, %v1761_v25  ;;  %v6347_v30 = vsel %vm255_vm2, %v1757_v19, %v1759_v26 }
 0x2ec   : > { %1777 = vst.msk [vmem:[#allocation2 + $0x28] sm:$0xff] %vm269_vm3, %v1765_v28  ;;  %v5766_v28 = vld [vmem:[%s6969_s1 + $0xd8] sm:$0xff]  }
 0x2ef   : > { %v6342_v29 = vld [vmem:[#allocation2 + $0x10] sm:$0xff] }
 0x2f0   : > { %1814 = vrot.lane.b32.xlu0 %v6342_v29, %s5859_s7 }
 0x2f3   : > { %v6349_v31 = vld [vmem:[#allocation2 + $0x28] sm:$0xff] }
 0x2f4   : > { %1818 = vrot.lane.b32.xlu0 %v6347_v30, %s5859_s7  ;;  %1820 = vrot.lane.b32.xlu1 %v6349_v31, %s5859_s7 }
 0x2f8   : > { %1816 = vrot.lane.b32.xlu0 %v6355_v32, %s5859_s7  ;;  %2075 = vrot.lane.b32.xlu1 %v6334_v21, %s5860_s8 }
 0x2fc   : > { %2077 = vrot.lane.b32.xlu0 %v6342_v29, %s5860_s8  ;;  %2073 = vrot.lane.b32.xlu1 %v6328_v20, %s5860_s8 }
 0x300   : > { %2081 = vrot.lane.b32.xlu0 %v6347_v30, %s5860_s8  ;;  %2083 = vrot.lane.b32.xlu1 %v6349_v31, %s5860_s8 }
 0x304   : > { %2079 = vrot.lane.b32.xlu0 %v6355_v32, %s5860_s8  ;;  %2232 = vrot.lane.b32.xlu1 %v6334_v21, %s5861_s9 }
 0x308   : > { %2234 = vrot.lane.b32.xlu0 %v6342_v29, %s5861_s9  ;;  %2230 = vrot.lane.b32.xlu1 %v6328_v20, %s5861_s9 }
 0x30c   : > { %2238 = vrot.lane.b32.xlu0 %v6347_v30, %s5861_s9  ;;  %2240 = vrot.lane.b32.xlu1 %v6349_v31, %s5861_s9 }
 0x310   : > { %2236 = vrot.lane.b32.xlu0 %v6355_v32, %s5861_s9  ;;  %2389 = vrot.lane.b32.xlu1 %v6334_v21, %s5862_s10 }
 0x314   : > { %2391 = vrot.lane.b32.xlu0 %v6342_v29, %s5862_s10  ;;  %2387 = vrot.lane.b32.xlu1 %v6328_v20, %s5862_s10 }
 0x318   : > { %2395 = vrot.lane.b32.xlu0 %v6347_v30, %s5862_s10  ;;  %2397 = vrot.lane.b32.xlu1 %v6349_v31, %s5862_s10 }
 0x31c   : > { %2393 = vrot.lane.b32.xlu0 %v6355_v32, %s5862_s10  ;;  %2546 = vrot.lane.b32.xlu1 %v6334_v21, %s5863_s11 }
 0x320   : > { %2548 = vrot.lane.b32.xlu0 %v6342_v29, %s5863_s11  ;;  %2544 = vrot.lane.b32.xlu1 %v6328_v20, %s5863_s11 }
 0x324   : > { %2552 = vrot.lane.b32.xlu0 %v6347_v30, %s5863_s11  ;;  %2554 = vrot.lane.b32.xlu1 %v6349_v31, %s5863_s11 }
 0x328   : > { %2550 = vrot.lane.b32.xlu0 %v6355_v32, %s5863_s11  ;;  %2703 = vrot.lane.b32.xlu1 %v6334_v21, %s5864_s12 }
 0x32c   : > { %2705 = vrot.lane.b32.xlu0 %v6342_v29, %s5864_s12  ;;  %2701 = vrot.lane.b32.xlu1 %v6328_v20, %s5864_s12 }
 0x330   : > { %2709 = vrot.lane.b32.xlu0 %v6347_v30, %s5864_s12  ;;  %2711 = vrot.lane.b32.xlu1 %v6349_v31, %s5864_s12 }
 0x334   : > { %2707 = vrot.lane.b32.xlu0 %v6355_v32, %s5864_s12  ;;  %2860 = vrot.lane.b32.xlu1 %v6334_v21, %s5865_s13 }
 0x338   : > { %2862 = vrot.lane.b32.xlu0 %v6342_v29, %s5865_s13  ;;  %2858 = vrot.lane.b32.xlu1 %v6328_v20, %s5865_s13 }
 0x33c   : > { %2866 = vrot.lane.b32.xlu0 %v6347_v30, %s5865_s13  ;;  %2868 = vrot.lane.b32.xlu1 %v6349_v31, %s5865_s13 }
 0x340   : > { %2864 = vrot.lane.b32.xlu0 %v6355_v32, %s5865_s13  ;;  %3017 = vrot.lane.b32.xlu1 %v6334_v21, %s5866_s14 }
 0x344   : > { %3019 = vrot.lane.b32.xlu0 %v6342_v29, %s5866_s14  ;;  %3015 = vrot.lane.b32.xlu1 %v6328_v20, %s5866_s14 }
 0x348   : > { %3023 = vrot.lane.b32.xlu0 %v6347_v30, %s5866_s14  ;;  %3025 = vrot.lane.b32.xlu1 %v6349_v31, %s5866_s14 }
 0x34c   : > { %3021 = vrot.lane.b32.xlu0 %v6355_v32, %s5866_s14  ;;  %3164 = vperm.xlu1 %5730, %v4962_v33  }
 0x350   : > { %3169 = vperm.xlu0 %5729, %v4963_v34   ;;  %3174 = vperm.xlu1 %5730, %v4964_v35  }
 0x352   : > { %v1811_v37 = vpop.permute.xlu1 %1810 }
 0x354   : > { %3179 = vperm.xlu0 %5729, %v4965_v36  }
 0x356   : > { %v1813_v38 = vpop.permute.xlu1 %1812 }
 0x357   : > { %v1822_v41 = vsel %vm334_vm4, %v1811_v37, %v1813_v38  ;;  %v5767_v37 = vld [vmem:[%s6969_s1 + $0xe0] sm:$0xff]  }
 0x362   : > { %v1815_v39 = vpop.permute.xlu0 %1814 }
 0x363   : > { %v1823_v40 = vsel %vm334_vm4, %v1813_v38, %v1815_v39 }
 0x364   : > { %1838 = vmatprep.subr.bf16.mxu1 %v1823_v40  ;;  %v5768_v40 = vld [vmem:[%s6969_s1 + $0xe8] sm:$0xff]  }
 0x365   : > { %1839 = vmatpush1.bf16.msra.mxu1 %v1822_v41 }
 0x366   : > { %v1821_v42 = vpop.permute.xlu1 %1820  ;;  %v1819_v43 = vpop.permute.xlu0 %1818 }
 0x367   : > { %v1825_v44 = vsel %vm334_vm4, %v1819_v43, %v1821_v42 }
 0x368   : > { %1840 = vmatprep.subr.bf16.mxu1 %v1825_v44 }
 0x36a   : > { %v1817_v45 = vpop.permute.xlu0 %1816  ;;  %v2076_v50 = vpop.permute.xlu1 %2075 }
 0x36b   : > { %v1824_v46 = vsel %vm334_vm4, %v1817_v45, %v1819_v43 }
 0x36c   : > { %1841 = vmatpush1.bf16.msra.mxu1 %v1824_v46 }
 0x36d   : > { %5243 = vmatprep.subr.bf16.mxu1 %v1815_v39 }
 0x36e   : > { %v2078_v51 = vpop.permute.xlu0 %2077  ;;  %v2074_v54 = vpop.permute.xlu1 %2073 }
 0x36f   : > { %4882 = vmatmul.mubr.msk.bf16.vlgmr.msra.gmra.mrb[12].mxu1 %vm345_vm5, %v5757_v47  ;;  %v2086_v53 = vsel %vm599_vm6, %v2076_v50, %v2078_v51  ;;  %v2085_v57 = vsel %vm599_vm6, %v2074_v54, %v2076_v50 }
 0x370   : > { %5244 = vmatpush3.bf16.msra.mxu1 %v1815_v39  ;;  %1880 = vmatprep.mubr.bf16.mxu1 %v5857_v0 }
 0x371   : > { %5245 = vmatprep.subr.bf16.mxu1 %v1821_v42 }
 0x372   : > { %v2082_v55 = vpop.permute.xlu0 %2081  ;;  %v2084_v56 = vpop.permute.xlu1 %2083 }
 0x373   : > { %v2088_v59 = vsel %vm599_vm6, %v2082_v55, %v2084_v56 }
 0x374   : > { %5246 = vmatpush3.bf16.msra.mxu1 %v1821_v42 }
 0x375   : > { %1956 = vmatprep.subr.bf16.mxu1 %v6334_v21 }
 0x376   : > { %v2080_v58 = vpop.permute.xlu0 %2079  ;;  %v2233_v62 = vpop.permute.xlu1 %2232 }
 0x377   : > { %4883 = vmatmul.mubr.msk.bf16.gmra.mrb[16].mxu1 %vm345_vm5, %v5758_v48  ;;  %v2087_v60 = vsel %vm599_vm6, %v2080_v58, %v2082_v55 }
 0x378   : > { %5247 = vmatprep.mubr.msk.bf16.mxu1 %vm345_vm5, %v5757_v47 }
 0x37a   : > { %v2235_v63 = vpop.permute.xlu0 %2234  ;;  %v2231_v4 = vpop.permute.xlu1 %2230 }
 0x37b   : > { %v2243_v3 = vsel %vm757_vm7, %v2233_v62, %v2235_v63  ;;  %v2242_v7 = vsel %vm757_vm7, %v2231_v4, %v2233_v62 }
 0x37e   : > { %v2239_v5 = vpop.permute.xlu0 %2238  ;;  %v2241_v6 = vpop.permute.xlu1 %2240 }
 0x37f   : > { %5248 = vmatmul.mubr.msk.bf16.vlgmr.msra.gmra.mrb[20].mxu1 %vm345_vm5, %v5758_v48  ;;  %v2245_v10 = vsel %vm757_vm7, %v2239_v5, %v2241_v6 }
 0x380   : > { %1957 = vmatpush1.bf16.msra.mxu1 %v6328_v20  ;;  %1988 = vmatprep.mubr.bf16.mxu1 %v5857_v0 }
 0x381   : > { %1958 = vmatprep.subr.bf16.mxu1 %v6347_v30 }
 0x382   : > { %v2237_v9 = vpop.permute.xlu0 %2236  ;;  %v2390_v12 = vpop.permute.xlu1 %2389 }
 0x383   : > { %v2244_v11 = vsel %vm757_vm7, %v2237_v9, %v2239_v5 }
 0x384   : > { %1959 = vmatpush1.bf16.msra.mxu1 %v6355_v32 }
 0x385   : > { %5251 = vmatprep.subr.bf16.mxu1 %v6342_v29 }
 0x386   : > { %v2392_v13 = vpop.permute.xlu0 %2391  ;;  %v2388_v17 = vpop.permute.xlu1 %2387 }
 0x387   : > { %4888 = vmatmul.mubr.msk.bf16.vlgmr.msra.gmra.mrb[12].mxu1 %vm345_vm5, %v5759_v49  ;;  %v2400_v16 = vsel %vm915_vm8, %v2390_v12, %v2392_v13  ;;  %v2399_v19 = vsel %vm915_vm8, %v2388_v17, %v2390_v12  ;;  %v5774_v12 = vld [vmem:[%s6969_s1 + $0x118] sm:$0xff]  }
 0x388   : > { %5252 = vmatpush3.bf16.msra.mxu1 %v6342_v29  ;;  %1998 = vmatprep.mubr.bf16.mxu1 %v5857_v0 }
 0x389   : > { %5253 = vmatprep.subr.bf16.mxu1 %v6349_v31 }
 0x38a   : > { %v2396_v14 = vpop.permute.xlu0 %2395  ;;  %v2398_v18 = vpop.permute.xlu1 %2397 }
 0x38b   : > { %v2402_v21 = vsel %vm915_vm8, %v2396_v14, %v2398_v18 }
 0x38c   : > { %5254 = vmatpush3.bf16.msra.mxu1 %v6349_v31 }
 0x38d   : > { %2101 = vmatprep.subr.bf16.mxu1 %v2086_v53 }
 0x38e   : > { %v2394_v20 = vpop.permute.xlu0 %2393  ;;  %v2547_v25 = vpop.permute.xlu1 %2546 }
 0x38f   : > { %4889 = vmatmul.mubr.msk.bf16.gmra.mrb[16].mxu1 %vm345_vm5, %v5760_v52  ;;  %v2401_v22 = vsel %vm915_vm8, %v2394_v20, %v2396_v14 }
 0x390   : > { %5255 = vmatprep.mubr.msk.bf16.mxu1 %vm345_vm5, %v5759_v49  ;;  %v5769_v49 = vld [vmem:[%s6969_s1 + $0xf0] sm:$0xff]  }
 0x392   : > { %v2549_v26 = vpop.permute.xlu0 %2548  ;;  %v2545_v30 = vpop.permute.xlu1 %2544 }
 0x393   : > { %v2557_v29 = vsel %vm1073_vm9, %v2547_v25, %v2549_v26  ;;  %v2556_v33 = vsel %vm1073_vm9, %v2545_v30, %v2547_v25 }
 0x396   : > { %v2553_v31 = vpop.permute.xlu0 %2552  ;;  %v2555_v32 = vpop.permute.xlu1 %2554 }
 0x397   : > { %5256 = vmatmul.mubr.msk.bf16.vlgmr.msra.gmra.mrb[20].mxu1 %vm345_vm5, %v5760_v52  ;;  %v2559_v35 = vsel %vm1073_vm9, %v2553_v31, %v2555_v32  ;;  %v5770_v52 = vld [vmem:[%s6969_s1 + $0xf8] sm:$0xff]  }
 0x398   : > { %2102 = vmatpush1.bf16.msra.mxu1 %v2085_v57  ;;  %2133 = vmatprep.mubr.bf16.mxu1 %v5857_v0 }
 0x399   : > { %2103 = vmatprep.subr.bf16.mxu1 %v2088_v59 }
 0x39a   : > { %v2551_v34 = vpop.permute.xlu0 %2550  ;;  %v2704_v38 = vpop.permute.xlu1 %2703 }
 0x39b   : > { %v2558_v36 = vsel %vm1073_vm9, %v2551_v34, %v2553_v31 }
 0x39c   : > { %2104 = vmatpush1.bf16.msra.mxu1 %v2087_v60 }
 0x39d   : > { %5259 = vmatprep.subr.bf16.mxu1 %v2078_v51 }
 0x39e   : > { %v2706_v39 = vpop.permute.xlu0 %2705  ;;  %v2702_v42 = vpop.permute.xlu1 %2701 }
 0x39f   : > { %4898 = vmatmul.mubr.msk.bf16.vlgmr.msra.gmra.mrb[12].mxu1 %vm345_vm5, %v5761_v61  ;;  %v2714_v41 = vsel %vm1231_vm10, %v2704_v38, %v2706_v39  ;;  %v2713_v45 = vsel %vm1231_vm10, %v2702_v42, %v2704_v38 }
 0x3a0   : > { %5260 = vmatpush3.bf16.msra.mxu1 %v2078_v51  ;;  %2143 = vmatprep.mubr.bf16.mxu1 %v5857_v0 }
 0x3a1   : > { %5261 = vmatprep.subr.bf16.mxu1 %v2084_v56 }
 0x3a2   : > { %v2710_v43 = vpop.permute.xlu0 %2709  ;;  %v2712_v44 = vpop.permute.xlu1 %2711 }
 0x3a3   : > { %v2716_v47 = vsel %vm1231_vm10, %v2710_v43, %v2712_v44 }
 0x3a4   : > { %5262 = vmatpush3.bf16.msra.mxu1 %v2084_v56 }
 0x3a5   : > { %2258 = vmatprep.subr.bf16.mxu1 %v2243_v3 }
 0x3a6   : > { %v2708_v46 = vpop.permute.xlu0 %2707  ;;  %v2861_v50 = vpop.permute.xlu1 %2860 }
 0x3a7   : > { %4899 = vmatmul.mubr.msk.bf16.gmra.mrb[16].mxu1 %vm345_vm5, %v5762_v2  ;;  %v2715_v48 = vsel %vm1231_vm10, %v2708_v46, %v2710_v43 }
 0x3a8   : > { %5263 = vmatprep.mubr.msk.bf16.mxu1 %vm345_vm5, %v5761_v61  ;;  %v5771_v61 = vld [vmem:[%s6969_s1 + $0x100] sm:$0xff]  }
 0x3aa   : > { %v2863_v51 = vpop.permute.xlu0 %2862  ;;  %v2859_v54 = vpop.permute.xlu1 %2858 }
 0x3ab   : > { %v2871_v53 = vsel %vm1389_vm11, %v2861_v50, %v2863_v51  ;;  %v2870_v57 = vsel %vm1389_vm11, %v2859_v54, %v2861_v50 }
 0x3ae   : > { %v2867_v55 = vpop.permute.xlu0 %2866  ;;  %v2869_v56 = vpop.permute.xlu1 %2868 }
 0x3af   : > { %5264 = vmatmul.mubr.msk.bf16.vlgmr.msra.gmra.mrb[20].mxu1 %vm345_vm5, %v5762_v2  ;;  %v2873_v59 = vsel %vm1389_vm11, %v2867_v55, %v2869_v56  ;;  %v5772_v2 = vld [vmem:[%s6969_s1 + $0x108] sm:$0xff]  }
 0x3b0   : > { %2259 = vmatpush1.bf16.msra.mxu1 %v2242_v7  ;;  %2290 = vmatprep.mubr.bf16.mxu1 %v5857_v0 }
 0x3b1   : > { %2260 = vmatprep.subr.bf16.mxu1 %v2245_v10 }
 0x3b2   : > { %v2865_v58 = vpop.permute.xlu0 %2864  ;;  %v3018_v62 = vpop.permute.xlu1 %3017 }
 0x3b3   : > { %v2872_v60 = vsel %vm1389_vm11, %v2865_v58, %v2867_v55 }
 0x3b4   : > { %2261 = vmatpush1.bf16.msra.mxu1 %v2244_v11 }
 0x3b5   : > { %5267 = vmatprep.subr.bf16.mxu1 %v2235_v63 }
 0x3b6   : > { %v3016_v4 = vpop.permute.xlu1 %3015 }
 0x3b7   : > { %4908 = vmatmul.mubr.msk.bf16.vlgmr.msra.gmra.mrb[12].mxu1 %vm345_vm5, %v5763_v8  ;;  %v3027_v7 = vsel %vm1547_vm12, %v3016_v4, %v3018_v62 }
 0x3b8   : > { %5268 = vmatpush3.bf16.msra.mxu1 %v2235_v63  ;;  %2300 = vmatprep.mubr.bf16.mxu1 %v5857_v0  ;;  %v3020_v63 = vpop.permute.xlu0 %3019 }
 0x3b9   : > { %5269 = vmatprep.subr.bf16.mxu1 %v2241_v6  ;;  %v3028_v3 = vsel %vm1547_vm12, %v3018_v62, %v3020_v63 }
 0x3bc   : > { %5270 = vmatpush3.bf16.msra.mxu1 %v2241_v6  ;;  %v3024_v5 = vpop.permute.xlu0 %3023  ;;  %v3026_v6 = vpop.permute.xlu1 %3025 }
 0x3bd   : > { %2415 = vmatprep.subr.bf16.mxu1 %v2400_v16  ;;  %v3030_v10 = vsel %vm1547_vm12, %v3024_v5, %v3026_v6 }
 0x3bf   : > { %4909 = vmatmul.mubr.msk.bf16.gmra.mrb[16].mxu1 %vm345_vm5, %v5764_v15 }
 0x3c0   : > { %5271 = vmatprep.mubr.msk.bf16.mxu1 %vm345_vm5, %v5763_v8  ;;  %v3022_v9 = vpop.permute.xlu0 %3021  ;;  %v5773_v8 = vld [vmem:[%s6969_s1 + $0x110] sm:$0xff]  }
 0x3c1   : > { %v3029_v11 = vsel %vm1547_vm12, %v3022_v9, %v3024_v5 }
 0x3c7   : > { %5272 = vmatmul.mubr.msk.bf16.vlgmr.msra.gmra.mrb[20].mxu1 %vm345_vm5, %v5764_v15 }
 0x3c8   : > { %2416 = vmatpush1.bf16.msra.mxu1 %v2399_v19  ;;  %2447 = vmatprep.mubr.bf16.mxu1 %v5857_v0 }
 0x3c9   : > { %2417 = vmatprep.subr.bf16.mxu1 %v2402_v21 }
 0x3cc   : > { %2418 = vmatpush1.bf16.msra.mxu1 %v2401_v22 }
 0x3cd   : > { %5275 = vmatprep.subr.bf16.mxu1 %v2392_v13 }
 0x3cf   : > { %4918 = vmatmul.mubr.msk.bf16.vlgmr.msra.gmra.mrb[12].mxu1 %vm345_vm5, %v5765_v23  ;;  %v3170_v14 = vpop.permute.xlu0 %3169 }
 0x3d0   : > { %5276 = vmatpush3.bf16.msra.mxu1 %v2392_v13  ;;  %2457 = vmatprep.mubr.bf16.mxu1 %v5857_v0  ;;  %v3165_v13 = vpop.permute.xlu1 %3164 }
 0x3d1   : > { %5277 = vmatprep.subr.bf16.mxu1 %v2398_v18 }
 0x3d3   : > { %v3180_v38 = vpop.permute.xlu0 %3179 }
 0x3d4   : > { %5278 = vmatpush3.bf16.msra.mxu1 %v2398_v18  ;;  %v3175_v31 = vpop.permute.xlu1 %3174 }
 0x3d5   : > { %2572 = vmatprep.subr.bf16.mxu1 %v2557_v29 }
 0x3d7   : > { %4919 = vmatmul.mubr.msk.bf16.gmra.mrb[16].mxu1 %vm345_vm5, %v5766_v28 }
 0x3d8   : > { %5279 = vmatprep.mubr.msk.bf16.mxu1 %vm345_vm5, %v5765_v23 }
 0x3df   : > { %5280 = vmatmul.mubr.msk.bf16.vlgmr.msra.gmra.mrb[20].mxu1 %vm345_vm5, %v5766_v28 }
 0x3e0   : > { %2573 = vmatpush1.bf16.msra.mxu1 %v2556_v33  ;;  %2604 = vmatprep.mubr.bf16.mxu1 %v5857_v0 }
 0x3e1   : > { %2574 = vmatprep.subr.bf16.mxu1 %v2559_v35 }
 0x3e4   : > { %2575 = vmatpush1.bf16.msra.mxu1 %v2558_v36 }
 0x3e5   : > { %5283 = vmatprep.subr.bf16.mxu1 %v2549_v26 }
 0x3e7   : > { %4928 = vmatmul.mubr.msk.bf16.vlgmr.msra.gmra.mrb[12].mxu1 %vm345_vm5, %v5767_v37 }
 0x3e8   : > { %5284 = vmatpush3.bf16.msra.mxu1 %v2549_v26  ;;  %2614 = vmatprep.mubr.bf16.mxu1 %v5857_v0 }
 0x3e9   : > { %5285 = vmatprep.subr.bf16.mxu1 %v2555_v32 }
 0x3ec   : > { %5286 = vmatpush3.bf16.msra.mxu1 %v2555_v32 }
 0x3ed   : > { %2729 = vmatprep.subr.bf16.mxu1 %v2714_v41 }
 0x3ef   : > { %4929 = vmatmul.mubr.msk.bf16.gmra.mrb[16].mxu1 %vm345_vm5, %v5768_v40 }
 0x3f0   : > { %5287 = vmatprep.mubr.msk.bf16.mxu1 %vm345_vm5, %v5767_v37 }
 0x3f7   : > { %5288 = vmatmul.mubr.msk.bf16.vlgmr.msra.gmra.mrb[20].mxu1 %vm345_vm5, %v5768_v40 }
 0x3f8   : > { %2730 = vmatpush1.bf16.msra.mxu1 %v2713_v45  ;;  %2761 = vmatprep.mubr.bf16.mxu1 %v5857_v0 }
 0x3f9   : > { %2731 = vmatprep.subr.bf16.mxu1 %v2716_v47 }
 0x3fc   : > { %2732 = vmatpush1.bf16.msra.mxu1 %v2715_v48 }
 0x3fd   : > { %5291 = vmatprep.subr.bf16.mxu1 %v2706_v39 }
 0x3ff   : > { %4938 = vmatmul.mubr.msk.bf16.vlgmr.msra.gmra.mrb[12].mxu1 %vm345_vm5, %v5769_v49 }
 0x400   : > { %5292 = vmatpush3.bf16.msra.mxu1 %v2706_v39  ;;  %2771 = vmatprep.mubr.bf16.mxu1 %v5857_v0 }
 0x401   : > { %5293 = vmatprep.subr.bf16.mxu1 %v2712_v44 }
 0x404   : > { %5294 = vmatpush3.bf16.msra.mxu1 %v2712_v44 }
 0x405   : > { %2886 = vmatprep.subr.bf16.mxu1 %v2871_v53 }
 0x407   : > { %4939 = vmatmul.mubr.msk.bf16.gmra.mrb[16].mxu1 %vm345_vm5, %v5770_v52 }
 0x408   : > { %5295 = vmatprep.mubr.msk.bf16.mxu1 %vm345_vm5, %v5769_v49 }
 0x40f   : > { %5296 = vmatmul.mubr.msk.bf16.vlgmr.msra.gmra.mrb[20].mxu1 %vm345_vm5, %v5770_v52 }
 0x410   : > { %2887 = vmatpush1.bf16.msra.mxu1 %v2870_v57  ;;  %2918 = vmatprep.mubr.bf16.mxu1 %v5857_v0 }
 0x411   : > { %2888 = vmatprep.subr.bf16.mxu1 %v2873_v59 }
 0x414   : > { %2889 = vmatpush1.bf16.msra.mxu1 %v2872_v60 }
 0x415   : > { %5299 = vmatprep.subr.bf16.mxu1 %v2863_v51 }
 0x417   : > { %4948 = vmatmul.mubr.msk.bf16.vlgmr.msra.gmra.mrb[12].mxu1 %vm345_vm5, %v5771_v61 }
 0x418   : > { %5300 = vmatpush3.bf16.msra.mxu1 %v2863_v51  ;;  %2928 = vmatprep.mubr.bf16.mxu1 %v5857_v0 }
 0x419   : > { %5301 = vmatprep.subr.bf16.mxu1 %v2869_v56 }
 0x41c   : > { %5302 = vmatpush3.bf16.msra.mxu1 %v2869_v56 }
 0x41d   : > { %3043 = vmatprep.subr.bf16.mxu1 %v3028_v3 }
 0x41f   : > { %4949 = vmatmul.mubr.msk.bf16.gmra.mrb[16].mxu1 %vm345_vm5, %v5772_v2 }
 0x420   : > { %5303 = vmatprep.mubr.msk.bf16.mxu1 %vm345_vm5, %v5771_v61 }
 0x427   : > { %5304 = vmatmul.mubr.msk.bf16.vlgmr.msra.gmra.mrb[20].mxu1 %vm345_vm5, %v5772_v2 }
 0x428   : > { %3044 = vmatpush1.bf16.msra.mxu1 %v3027_v7  ;;  %3075 = vmatprep.mubr.bf16.mxu1 %v5857_v0 }
 0x429   : > { %3045 = vmatprep.subr.bf16.mxu1 %v3030_v10 }
 0x42c   : > { %3046 = vmatpush1.bf16.msra.mxu1 %v3029_v11 }
 0x42d   : > { %5307 = vmatprep.subr.bf16.mxu1 %v3020_v63 }
 0x42f   : > { %4958 = vmatmul.mubr.msk.bf16.vlgmr.msra.gmra.mrb[12].mxu1 %vm345_vm5, %v5773_v8 }
 0x430   : > { %5308 = vmatpush3.bf16.msra.mxu1 %v3020_v63  ;;  %3085 = vmatprep.mubr.bf16.mxu1 %v5857_v0 }
 0x431   : > { %5309 = vmatprep.subr.bf16.mxu1 %v3026_v6 }
 0x434   : > { %5310 = vmatpush3.bf16.msra.mxu1 %v3026_v6 }
 0x437   : > { %4959 = vmatmul.mubr.msk.bf16.gmra.mrb[16].mxu1 %vm345_vm5, %v5774_v12 }
 0x438   : > { %5311 = vmatprep.mubr.msk.bf16.mxu1 %vm345_vm5, %v5773_v8 }
 0x43f   : > { %5312 = vmatmul.mubr.msk.bf16.vlgmr.msra.gmra.mrb[20].mxu1 %vm345_vm5, %v5774_v12 }
 0x502   : > { %v3077_v15 = vpop.f32.mrb[12].mxu1 }
 0x503   : > { %v3182_v16 = vadd.f32 %v3165_v13, %v3077_v15  ;;  %v3079_v17 = vpop.f32.mrb[13].mxu1 }
 0x504   : > { %v3183_v18 = vadd.f32 %v3165_v13, %v3079_v17  ;;  %v3081_v19 = vpop.f32.mrb[14].mxu1 }
 0x505   : > { %v3194_v20 = vmax.f32 %v3182_v16, 0.0  ;;  %v3185_v21 = vadd.f32 %v3170_v14, %v3081_v19  ;;  %v3083_v22 = vpop.f32.mrb[15].mxu1 }
 0x506   : > { %v3195_v23 = vmax.f32 %v3183_v18, 0.0  ;;  %v3186_v25 = vadd.f32 %v3170_v14, %v3083_v22  ;;  %v5056_v22 = vld [vmem:[%s6970_s2 + $0x40] sm:$0xff] }
 0x507   : > { %v3197_v26 = vmax.f32 %v3185_v21, 0.0  ;;  %v3206_v29 = vmul.f32 %v3194_v20, %v6303_v24 }
 0x508   : > { %v3198_v28 = vmax.f32 %v3186_v25, 0.0  ;;  %v3207_v32 = vmul.f32 %v3195_v23, %v6305_v27  ;;  %v5057_v23 = vld [vmem:[%s6970_s2 + $0x48] sm:$0xff]  ;;  %v5058_v25 = vld [vmem:[%s6970_s2 + $0x50] sm:$0xff] }
 0x509   : > { %v3209_v30 = vmul.f32 %v3197_v26, %v6303_v24  ;;  %v5059_v26 = vld [vmem:[%s6970_s2 + $0x58] sm:$0xff] }
 0x50a   : > { %v3210_v33 = vmul.f32 %v3198_v28, %v6305_v27  ;;  %v3087_v34 = vpop.f32.mrb[16].mxu1 }
 0x50b   : > { %v3218_v35 = vpack.c.bf16 %v3209_v30, %v3206_v29  ;;  %v3188_v36 = vadd.f32 %v3175_v31, %v3087_v34  ;;  %v3089_v37 = vpop.f32.mrb[17].mxu1 }
 0x50c   : > { %v3219_v39 = vpack.c.bf16 %v3210_v33, %v3207_v32  ;;  %v3189_v40 = vadd.f32 %v3175_v31, %v3089_v37  ;;  %v3091_v41 = vpop.f32.mrb[18].mxu1 }
 0x50d   : > { %v3200_v42 = vmax.f32 %v3188_v36, 0.0  ;;  %v3191_v43 = vadd.f32 %v3180_v38, %v3091_v41  ;;  %v3093_v44 = vpop.f32.mrb[19].mxu1  ;;  %3230 = vrot.lane.b32.xlu1 %v3218_v35, %s5858_s6 }
 0x50e   : > { %v3201_v45 = vmax.f32 %v3189_v40, 0.0  ;;  %v3192_v46 = vadd.f32 %v3180_v38, %v3093_v44  ;;  %3232 = vrot.lane.b32.xlu0 %v3219_v39, %s5858_s6  ;;  %v5776_v39 = vld [vmem:[%s6969_s1 + $0x138] sm:$0xff]   ;;  %v5777_v40 = vld [vmem:[%s6969_s1 + $0x120] sm:$0xff]  }
 0x50f   : > { %v3203_v47 = vmax.f32 %v3191_v43, 0.0  ;;  %v3212_v49 = vmul.f32 %v3200_v42, %v6303_v24  ;;  %v5778_v43 = vld [vmem:[%s6969_s1 + $0x128] sm:$0xff]  }
 0x510   : > { %v3204_v48 = vmax.f32 %v3192_v46, 0.0  ;;  %v3213_v51 = vmul.f32 %v3201_v45, %v6305_v27 }
 0x511   : > { %v3215_v50 = vmul.f32 %v3203_v47, %v6303_v24 }
 0x512   : > { %v3216_v52 = vmul.f32 %v3204_v48, %v6305_v27  ;;  %v5313_v53 = vpop.f32.mrb[20].mxu1 }
 0x513   : > { %v3221_v54 = vpack.c.bf16 %v3215_v50, %v3212_v49  ;;  %v3190_v55 = vadd.f32 %v5313_v53, %v3175_v31  ;;  %v3130_v56 = vpop.f32.mrb[21].mxu1 }
 0x514   : > { %v3222_v57 = vpack.c.bf16 %v3216_v52, %v3213_v51  ;;  %v3184_v58 = vadd.f32 %v3165_v13, %v3130_v56  ;;  %v5314_v59 = vpop.f32.mrb[22].mxu1  ;;  %v5779_v52 = vld [vmem:[%s6969_s1 + $0x140] sm:$0xff]  }
 0x515   : > { %v3202_v60 = vmax.f32 %v3190_v55, 0.0  ;;  %v3193_v61 = vadd.f32 %v5314_v59, %v3180_v38  ;;  %v3133_v62 = vpop.f32.mrb[23].mxu1  ;;  %3236 = vrot.lane.b32.xlu0 %v3221_v54, %s5858_s6  ;;  %v5775_v38 = vld [vmem:[%s6969_s1 + $0x130] sm:$0xff]   ;;  %v5780_v55 = vld [vmem:[%s6969_s1 + $0x148] sm:$0xff]  }
 0x516   : > { %v3196_v63 = vmax.f32 %v3184_v58, 0.0  ;;  %v3187_v2 = vadd.f32 %v3170_v14, %v3133_v62 }
 0x517   : > { %v3205_v3 = vmax.f32 %v3193_v61, 0.0  ;;  %v3214_v4 = vmul.f32 %v3202_v60, %v6317_v1 }
 0x518   : > { %v3199_v24 = vmax.f32 %v3187_v2, 0.0  ;;  %v3208_v5 = vmul.f32 %v3196_v63, %v6317_v1  ;;  %v5781_v2 = vld [vmem:[%s6969_s1 + $0x150] sm:$0xff]  }
 0x519   : > { %v3217_v27 = vmul.f32 %v3205_v3, %v6317_v1 }
 0x51a   : > { %v3211_v6 = vmul.f32 %v3199_v24, %v6317_v1 }
 0x51b   : > { %v3223_v7 = vpack.c.bf16 %v3217_v27, %v3214_v4  ;;  %v5782_v4 = vld [vmem:[%s6969_s1 + $0x158] sm:$0xff]  }
 0x51c   : > { %v3220_v9 = vpack.c.bf16 %v3211_v6, %v3208_v5 }
 0x51d   : > { %3240 = vrot.lane.b32.xlu0 %v3223_v7, %s5858_s6 }
 0x51e   : > { %3234 = vrot.lane.b32.xlu1 %v3220_v9, %s5858_s6 }
 0x522   : > { %3238 = vrot.lane.b32.xlu1 %v3222_v57, %s5858_s6  ;;  %s6915_s6 = scalar_lea.hbm %s6972_s4, %s5677_s30 }
 0x57f   : > { %v3231_v10 = vpop.permute.xlu1 %3230 }
 0x580   : > { %3252 = vst.msk [vmem:[#allocation2] sm:$0xff] %vm266_vm1, %v3231_v10  ;;  %v3233_v11 = vpop.permute.xlu0 %3232 }
 0x581   : > { %v6622_v8 = vsel %vm255_vm2, %v3231_v10, %v3233_v11 }
 0x587   : > { %v3237_v12 = vpop.permute.xlu0 %3236  ;;  %v6624_v13 = vld [vmem:[#allocation2] sm:$0xff] }
 0x588   : > { %3255 = vst.msk [vmem:[#allocation2 + $0x18] sm:$0xff] %vm266_vm1, %v3237_v12  ;;  %3290 = vrot.lane.b32.xlu1 %v6624_v13, %s5859_s7 }
 0x58c   : > { %3292 = vrot.lane.b32.xlu1 %v6622_v8, %s5859_s7 }
 0x58f   : > { %v3241_v16 = vpop.permute.xlu0 %3240  ;;  %v6648_v21 = vld [vmem:[#allocation2 + $0x18] sm:$0xff] }
 0x590   : > { %v3235_v1 = vpop.permute.xlu1 %3234 }
 0x591   : > { %v3243_v15 = vsel %vm255_vm2, %v3233_v11, %v3235_v1 }
 0x592   : > { %3254 = vst.msk [vmem:[#allocation2 + $0x10] sm:$0xff] %vm269_vm3, %v3243_v15  ;;  %v5784_v15 = vld [vmem:[%s6969_s1 + $0x168] sm:$0xff]  }
 0x594   : > { %v3239_v17 = vpop.permute.xlu1 %3238 }
 0x595   : > { %v6634_v14 = vsel %vm255_vm2, %v3237_v12, %v3239_v17  ;;  %v3245_v18 = vsel %vm255_vm2, %v3239_v17, %v3241_v16  ;;  %v5783_v12 = vld [vmem:[%s6969_s1 + $0x160] sm:$0xff]  }
 0x596   : > { %3257 = vst.msk [vmem:[#allocation2 + $0x28] sm:$0xff] %vm269_vm3, %v3245_v18 }
 0x599   : > { %v6638_v19 = vld [vmem:[#allocation2 + $0x10] sm:$0xff] }
 0x59a   : > { %3294 = vrot.lane.b32.xlu0 %v6638_v19, %s5859_s7 }
 0x59d   : > { %v6642_v20 = vld [vmem:[#allocation2 + $0x28] sm:$0xff] }
 0x59e   : > { %3298 = vrot.lane.b32.xlu0 %v6634_v14, %s5859_s7  ;;  %3300 = vrot.lane.b32.xlu1 %v6642_v20, %s5859_s7 }
 0x5a2   : > { %3296 = vrot.lane.b32.xlu0 %v6648_v21, %s5859_s7  ;;  %3555 = vrot.lane.b32.xlu1 %v6622_v8, %s5860_s8  ;;  %s5793_s7 = scalar_lea.vmem %s6919_s5, 1536 }
 0x5a3   : > { %p5794_p11 = scmp.ne.s32.totalorder %s6919_s5, %s5793_s7 }
 0x5a5   : > { %p5795_p12 = pnand %p5794_p11, %p5933_p5 }
 0x5a6   : > { %3557 = vrot.lane.b32.xlu0 %v6638_v19, %s5860_s8  ;;  %3553 = vrot.lane.b32.xlu1 %v6624_v13, %s5860_s8 }
 0x5a7   : > { %p5796_p13 = pneg %p5795_p12 }
 0x5aa   : > { %3561 = vrot.lane.b32.xlu0 %v6634_v14, %s5860_s8  ;;  %3563 = vrot.lane.b32.xlu1 %v6642_v20, %s5860_s8 }
 0x5ae   : > { %3559 = vrot.lane.b32.xlu0 %v6648_v21, %s5860_s8  ;;  %3712 = vrot.lane.b32.xlu1 %v6622_v8, %s5861_s9  ;;  %s5867_s8 = smov [#allocation3]  }
 0x5b2   : > { %3714 = vrot.lane.b32.xlu0 %v6638_v19, %s5861_s9  ;;  %3710 = vrot.lane.b32.xlu1 %v6624_v13, %s5861_s9 }
 0x5b6   : > { %3718 = vrot.lane.b32.xlu0 %v6634_v14, %s5861_s9  ;;  %3720 = vrot.lane.b32.xlu1 %v6642_v20, %s5861_s9 }
 0x5ba   : > { %3716 = vrot.lane.b32.xlu0 %v6648_v21, %s5861_s9  ;;  %3869 = vrot.lane.b32.xlu1 %v6622_v8, %s5862_s10  ;;  %s5797_s9 = sshll.u32 %s5867_s8, 4  ;;  %s5798_s9 = int_to_ptr.vmem [resolvable:$false] %s5797_s9 }
 0x5bb   : > { %p5800_p0 = scmp.lt.s32.totalorder %s6919_s5, %s5798_s9 }
 0x5be   : > { %3871 = vrot.lane.b32.xlu0 %v6638_v19, %s5862_s10  ;;  %3867 = vrot.lane.b32.xlu1 %v6624_v13, %s5862_s10 }
 0x5c2   : > { %3875 = vrot.lane.b32.xlu0 %v6634_v14, %s5862_s10  ;;  %3877 = vrot.lane.b32.xlu1 %v6642_v20, %s5862_s10 }
 0x5c6   : > { %3873 = vrot.lane.b32.xlu0 %v6648_v21, %s5862_s10  ;;  %4026 = vrot.lane.b32.xlu1 %v6622_v8, %s5863_s11  ;;  %s5799_s10 = scalar_lea.vmem %s5798_s9, 3072 }
 0x5c7   : > { %p5801_p1 = scmp.lt.s32.totalorder %s5799_s10, %s5793_s7 }
 0x5c9   : > { %p5802_p2 = por %p5801_p1, %p5800_p0 }
 0x5ca   : > { %4028 = vrot.lane.b32.xlu0 %v6638_v19, %s5863_s11  ;;  %4024 = vrot.lane.b32.xlu1 %v6624_v13, %s5863_s11 }
 0x5cb   : > { %p5803_p3 = pnand %p5802_p2, %p5796_p13 }
 0x5ce   : > { %4032 = vrot.lane.b32.xlu0 %v6634_v14, %s5863_s11  ;;  %4034 = vrot.lane.b32.xlu1 %v6642_v20, %s5863_s11 }
 0x5d2   : > { %4030 = vrot.lane.b32.xlu0 %v6648_v21, %s5863_s11  ;;  %4183 = vrot.lane.b32.xlu1 %v6622_v8, %s5864_s12 }
 0x5d6   : > { %4185 = vrot.lane.b32.xlu0 %v6638_v19, %s5864_s12  ;;  %4181 = vrot.lane.b32.xlu1 %v6624_v13, %s5864_s12 }
 0x5da   : > { %4189 = vrot.lane.b32.xlu0 %v6634_v14, %s5864_s12  ;;  %4191 = vrot.lane.b32.xlu1 %v6642_v20, %s5864_s12 }
 0x5de   : > { %4187 = vrot.lane.b32.xlu0 %v6648_v21, %s5864_s12  ;;  %4340 = vrot.lane.b32.xlu1 %v6622_v8, %s5865_s13 }
 0x5e2   : > { %4342 = vrot.lane.b32.xlu0 %v6638_v19, %s5865_s13  ;;  %4338 = vrot.lane.b32.xlu1 %v6624_v13, %s5865_s13 }
 0x5e6   : > { %4346 = vrot.lane.b32.xlu0 %v6634_v14, %s5865_s13  ;;  %4348 = vrot.lane.b32.xlu1 %v6642_v20, %s5865_s13 }
 0x5ea   : > { %4344 = vrot.lane.b32.xlu0 %v6648_v21, %s5865_s13  ;;  %4497 = vrot.lane.b32.xlu1 %v6622_v8, %s5866_s14 }
 0x5ee   : > { %4499 = vrot.lane.b32.xlu0 %v6638_v19, %s5866_s14  ;;  %4495 = vrot.lane.b32.xlu1 %v6624_v13, %s5866_s14 }
 0x5f2   : > { %4503 = vrot.lane.b32.xlu0 %v6634_v14, %s5866_s14  ;;  %4505 = vrot.lane.b32.xlu1 %v6642_v20, %s5866_s14 }
 0x5f6   : > { %4501 = vrot.lane.b32.xlu0 %v6648_v21, %s5866_s14  ;;  %4644 = vperm.xlu1 %5730, %v5056_v22  }
 0x5fa   : > { %4649 = vperm.xlu0 %5729, %v5057_v23   ;;  %4654 = vperm.xlu1 %5730, %v5058_v25   ;;  %v3291_v28 = vpop.permute.xlu1 %3290  ;;  %v5785_v23 = vld [vmem:[%s6969_s1 + $0x170] sm:$0xff]  }
 0x5fe   : > { %4659 = vperm.xlu0 %5729, %v5059_v26   ;;  %v3293_v29 = vpop.permute.xlu1 %3292 }
 0x5ff   : > { %v3302_v32 = vsel %vm334_vm4, %v3291_v28, %v3293_v29  ;;  %v5786_v28 = vld [vmem:[%s6969_s1 + $0x178] sm:$0xff]  }
 0x60c   : > { %v3295_v30 = vpop.permute.xlu0 %3294 }
 0x60d   : > { %v3303_v31 = vsel %vm334_vm4, %v3293_v29, %v3295_v30 }
 0x60e   : > { %3318 = vmatprep.subr.bf16.mxu0 %v3303_v31 }
 0x60f   : > { %3319 = vmatpush1.bf16.msra.mxu0 %v3302_v32 }
 0x610   : > { %v3301_v33 = vpop.permute.xlu1 %3300  ;;  %v3299_v34 = vpop.permute.xlu0 %3298 }
 0x611   : > { %v3305_v35 = vsel %vm334_vm4, %v3299_v34, %v3301_v33 }
 0x612   : > { %3320 = vmatprep.subr.bf16.mxu0 %v3305_v35 }
 0x614   : > { %v3297_v36 = vpop.permute.xlu0 %3296  ;;  %v3556_v41 = vpop.permute.xlu1 %3555 }
 0x615   : > { %v3304_v37 = vsel %vm334_vm4, %v3297_v36, %v3299_v34 }
 0x616   : > { %3321 = vmatpush1.bf16.msra.mxu0 %v3304_v37  ;;  %v5787_v37 = vld [vmem:[%s6969_s1 + $0x180] sm:$0xff]  }
 0x617   : > { %5315 = vmatprep.subr.bf16.mxu0 %v3295_v30 }
 0x618   : > { %v3558_v42 = vpop.permute.xlu0 %3557  ;;  %v3554_v45 = vpop.permute.xlu1 %3553 }
 0x619   : > { %4976 = vmatmul.mubr.msk.bf16.vlgmr.msra.gmra.mrb[8].mxu0 %vm345_vm5, %v5775_v38  ;;  %v3566_v44 = vsel %vm599_vm6, %v3556_v41, %v3558_v42  ;;  %v3565_v48 = vsel %vm599_vm6, %v3554_v45, %v3556_v41 }
 0x61a   : > { %5316 = vmatpush3.bf16.msra.mxu0 %v3295_v30  ;;  %3360 = vmatprep.mubr.bf16.mxu0 %v5857_v0 }
 0x61b   : > { %5317 = vmatprep.subr.bf16.mxu0 %v3301_v33 }
 0x61c   : > { %v3562_v46 = vpop.permute.xlu0 %3561  ;;  %v3564_v47 = vpop.permute.xlu1 %3563 }
 0x61d   : > { %v3568_v50 = vsel %vm599_vm6, %v3562_v46, %v3564_v47 }
 0x61e   : > { %5318 = vmatpush3.bf16.msra.mxu0 %v3301_v33 }
 0x61f   : > { %3436 = vmatprep.subr.bf16.mxu0 %v6622_v8 }
 0x620   : > { %v3560_v49 = vpop.permute.xlu0 %3559  ;;  %v3713_v53 = vpop.permute.xlu1 %3712 }
 0x621   : > { %4977 = vmatmul.mubr.msk.bf16.gmra.mrb[12].mxu0 %vm345_vm5, %v5776_v39  ;;  %v3567_v51 = vsel %vm599_vm6, %v3560_v49, %v3562_v46  ;;  %v5789_v49 = vld [vmem:[%s6969_s1 + $0x190] sm:$0xff]  }
 0x622   : > { %5319 = vmatprep.mubr.msk.bf16.mxu0 %vm345_vm5, %v5775_v38 }
 0x624   : > { %v3715_v54 = vpop.permute.xlu0 %3714  ;;  %v3711_v57 = vpop.permute.xlu1 %3710 }
 0x625   : > { %v3723_v56 = vsel %vm757_vm7, %v3713_v53, %v3715_v54  ;;  %v3722_v60 = vsel %vm757_vm7, %v3711_v57, %v3713_v53 }
 0x628   : > { %v3719_v58 = vpop.permute.xlu0 %3718  ;;  %v3721_v59 = vpop.permute.xlu1 %3720 }
 0x629   : > { %5320 = vmatmul.mubr.msk.bf16.vlgmr.msra.gmra.mrb[16].mxu0 %vm345_vm5, %v5776_v39  ;;  %v3725_v62 = vsel %vm757_vm7, %v3719_v58, %v3721_v59 }
 0x62a   : > { %3437 = vmatpush1.bf16.msra.mxu0 %v6624_v13  ;;  %3468 = vmatprep.mubr.bf16.mxu0 %v5857_v0 }
 0x62b   : > { %3438 = vmatprep.subr.bf16.mxu0 %v6634_v14 }
 0x62c   : > { %v3717_v61 = vpop.permute.xlu0 %3716  ;;  %v3870_v3 = vpop.permute.xlu1 %3869 }
 0x62d   : > { %v3724_v63 = vsel %vm757_vm7, %v3717_v61, %v3719_v58  ;;  %v5791_v61 = vld [vmem:[%s6969_s1 + $0x1a0] sm:$0xff]  }
 0x62e   : > { %3439 = vmatpush1.bf16.msra.mxu0 %v6648_v21 }
 0x62f   : > { %5323 = vmatprep.subr.bf16.mxu0 %v6638_v19 }
 0x630   : > { %v3872_v24 = vpop.permute.xlu0 %3871  ;;  %v3868_v5 = vpop.permute.xlu1 %3867 }
 0x631   : > { %4982 = vmatmul.mubr.msk.bf16.vlgmr.msra.gmra.mrb[8].mxu0 %vm345_vm5, %v5777_v40  ;;  %v3880_v27 = vsel %vm915_vm8, %v3870_v3, %v3872_v24  ;;  %v3879_v9 = vsel %vm915_vm8, %v3868_v5, %v3870_v3 }
 0x632   : > { %5324 = vmatpush3.bf16.msra.mxu0 %v6638_v19  ;;  %3478 = vmatprep.mubr.bf16.mxu0 %v5857_v0 }
 0x633   : > { %5325 = vmatprep.subr.bf16.mxu0 %v6642_v20 }
 0x634   : > { %v3876_v6 = vpop.permute.xlu0 %3875  ;;  %v3878_v7 = vpop.permute.xlu1 %3877 }
 0x635   : > { %v3882_v11 = vsel %vm915_vm8, %v3876_v6, %v3878_v7 }
 0x636   : > { %5326 = vmatpush3.bf16.msra.mxu0 %v6642_v20 }
 0x637   : > { %3581 = vmatprep.subr.bf16.mxu0 %v3566_v44 }
 0x638   : > { %v3874_v10 = vpop.permute.xlu0 %3873  ;;  %v4027_v13 = vpop.permute.xlu1 %4026 }
 0x639   : > { %4983 = vmatmul.mubr.msk.bf16.gmra.mrb[12].mxu0 %vm345_vm5, %v5778_v43  ;;  %v3881_v8 = vsel %vm915_vm8, %v3874_v10, %v3876_v6 }
 0x63a   : > { %5327 = vmatprep.mubr.msk.bf16.mxu0 %vm345_vm5, %v5777_v40  ;;  %v5788_v40 = vld [vmem:[%s6969_s1 + $0x188] sm:$0xff]  }
 0x63c   : > { %v4029_v1 = vpop.permute.xlu0 %4028  ;;  %v4025_v17 = vpop.permute.xlu1 %4024 }
 0x63d   : > { %v4037_v16 = vsel %vm1073_vm9, %v4027_v13, %v4029_v1  ;;  %v4036_v19 = vsel %vm1073_vm9, %v4025_v17, %v4027_v13 }
 0x640   : > { %v4033_v14 = vpop.permute.xlu0 %4032  ;;  %v4035_v18 = vpop.permute.xlu1 %4034 }
 0x641   : > { %5328 = vmatmul.mubr.msk.bf16.vlgmr.msra.gmra.mrb[16].mxu0 %vm345_vm5, %v5778_v43  ;;  %v4039_v21 = vsel %vm1073_vm9, %v4033_v14, %v4035_v18 }
 0x642   : > { %3582 = vmatpush1.bf16.msra.mxu0 %v3565_v48  ;;  %3613 = vmatprep.mubr.bf16.mxu0 %v5857_v0 }
 0x643   : > { %3583 = vmatprep.subr.bf16.mxu0 %v3568_v50 }
 0x644   : > { %v4031_v20 = vpop.permute.xlu0 %4030  ;;  %v4184_v25 = vpop.permute.xlu1 %4183 }
 0x645   : > { %v4038_v22 = vsel %vm1073_vm9, %v4031_v20, %v4033_v14 }
 0x646   : > { %3584 = vmatpush1.bf16.msra.mxu0 %v3567_v51 }
 0x647   : > { %5331 = vmatprep.subr.bf16.mxu0 %v3558_v42 }
 0x648   : > { %v4186_v26 = vpop.permute.xlu0 %4185  ;;  %v4182_v30 = vpop.permute.xlu1 %4181 }
 0x649   : > { %4992 = vmatmul.mubr.msk.bf16.vlgmr.msra.gmra.mrb[8].mxu0 %vm345_vm5, %v5779_v52  ;;  %v4194_v29 = vsel %vm1231_vm10, %v4184_v25, %v4186_v26  ;;  %v4193_v33 = vsel %vm1231_vm10, %v4182_v30, %v4184_v25 }
 0x64a   : > { %5332 = vmatpush3.bf16.msra.mxu0 %v3558_v42  ;;  %3623 = vmatprep.mubr.bf16.mxu0 %v5857_v0 }
 0x64b   : > { %5333 = vmatprep.subr.bf16.mxu0 %v3564_v47 }
 0x64c   : > { %v4190_v31 = vpop.permute.xlu0 %4189  ;;  %v4192_v32 = vpop.permute.xlu1 %4191 }
 0x64d   : > { %v4196_v35 = vsel %vm1231_vm10, %v4190_v31, %v4192_v32 }
 0x64e   : > { %5334 = vmatpush3.bf16.msra.mxu0 %v3564_v47 }
 0x64f   : > { %3738 = vmatprep.subr.bf16.mxu0 %v3723_v56 }
 0x650   : > { %v4188_v34 = vpop.permute.xlu0 %4187  ;;  %v4341_v38 = vpop.permute.xlu1 %4340 }
 0x651   : > { %4993 = vmatmul.mubr.msk.bf16.gmra.mrb[12].mxu0 %vm345_vm5, %v5780_v55  ;;  %v4195_v36 = vsel %vm1231_vm10, %v4188_v34, %v4190_v31 }
 0x652   : > { %5335 = vmatprep.mubr.msk.bf16.mxu0 %vm345_vm5, %v5779_v52  ;;  %v5790_v52 = vld [vmem:[%s6969_s1 + $0x198] sm:$0xff]  }
 0x654   : > { %v4343_v39 = vpop.permute.xlu0 %4342  ;;  %v4339_v42 = vpop.permute.xlu1 %4338 }
 0x655   : > { %v4351_v41 = vsel %vm1389_vm11, %v4341_v38, %v4343_v39  ;;  %v4350_v45 = vsel %vm1389_vm11, %v4339_v42, %v4341_v38 }
 0x658   : > { %v4347_v43 = vpop.permute.xlu0 %4346  ;;  %v4349_v44 = vpop.permute.xlu1 %4348 }
 0x659   : > { %5336 = vmatmul.mubr.msk.bf16.vlgmr.msra.gmra.mrb[16].mxu0 %vm345_vm5, %v5780_v55  ;;  %v4353_v47 = vsel %vm1389_vm11, %v4347_v43, %v4349_v44 }
 0x65a   : > { %3739 = vmatpush1.bf16.msra.mxu0 %v3722_v60  ;;  %3770 = vmatprep.mubr.bf16.mxu0 %v5857_v0 }
 0x65b   : > { %3740 = vmatprep.subr.bf16.mxu0 %v3725_v62  ;;  %v5792_v62 = vld [vmem:[%s6969_s1 + $0x1a8] sm:$0xff]  }
 0x65c   : > { %v4345_v46 = vpop.permute.xlu0 %4344  ;;  %v4498_v50 = vpop.permute.xlu1 %4497 }
 0x65d   : > { %v4352_v48 = vsel %vm1389_vm11, %v4345_v46, %v4347_v43 }
 0x65e   : > { %3741 = vmatpush1.bf16.msra.mxu0 %v3724_v63 }
 0x65f   : > { %5339 = vmatprep.subr.bf16.mxu0 %v3715_v54 }
 0x660   : > { %v4500_v51 = vpop.permute.xlu0 %4499 }
 0x661   : > { %5002 = vmatmul.mubr.msk.bf16.vlgmr.msra.gmra.mrb[8].mxu0 %vm345_vm5, %v5781_v2  ;;  %v4508_v53 = vsel %vm1547_vm12, %v4498_v50, %v4500_v51 }
 0x662   : > { %5340 = vmatpush3.bf16.msra.mxu0 %v3715_v54  ;;  %3780 = vmatprep.mubr.bf16.mxu0 %v5857_v0  ;;  %v4496_v54 = vpop.permute.xlu1 %4495 }
 0x663   : > { %5341 = vmatprep.subr.bf16.mxu0 %v3721_v59  ;;  %v4507_v57 = vsel %vm1547_vm12, %v4496_v54, %v4498_v50 }
 0x664   : > { %v4504_v55 = vpop.permute.xlu0 %4503 }
 0x666   : > { %5342 = vmatpush3.bf16.msra.mxu0 %v3721_v59  ;;  %v4506_v56 = vpop.permute.xlu1 %4505 }
 0x667   : > { %3895 = vmatprep.subr.bf16.mxu0 %v3880_v27  ;;  %v4510_v59 = vsel %vm1547_vm12, %v4504_v55, %v4506_v56 }
 0x668   : > { %v4502_v58 = vpop.permute.xlu0 %4501 }
 0x669   : > { %5003 = vmatmul.mubr.msk.bf16.gmra.mrb[12].mxu0 %vm345_vm5, %v5782_v4  ;;  %v4509_v60 = vsel %vm1547_vm12, %v4502_v58, %v4504_v55 }
 0x66a   : > { %5343 = vmatprep.mubr.msk.bf16.mxu0 %vm345_vm5, %v5781_v2 }
 0x671   : > { %5344 = vmatmul.mubr.msk.bf16.vlgmr.msra.gmra.mrb[16].mxu0 %vm345_vm5, %v5782_v4 }
 0x672   : > { %3896 = vmatpush1.bf16.msra.mxu0 %v3879_v9  ;;  %3927 = vmatprep.mubr.bf16.mxu0 %v5857_v0 }
 0x673   : > { %3897 = vmatprep.subr.bf16.mxu0 %v3882_v11 }
 0x675   : > { %v4645_v63 = vpop.permute.xlu1 %4644 }
 0x676   : > { %3898 = vmatpush1.bf16.msra.mxu0 %v3881_v8 }
 0x677   : > { %5347 = vmatprep.subr.bf16.mxu0 %v3872_v24 }
 0x679   : > { %5012 = vmatmul.mubr.msk.bf16.vlgmr.msra.gmra.mrb[8].mxu0 %vm345_vm5, %v5783_v12 }
 0x67a   : > { %5348 = vmatpush3.bf16.msra.mxu0 %v3872_v24  ;;  %3937 = vmatprep.mubr.bf16.mxu0 %v5857_v0 }
 0x67b   : > { %5349 = vmatprep.subr.bf16.mxu0 %v3878_v7 }
 0x67e   : > { %5350 = vmatpush3.bf16.msra.mxu0 %v3878_v7 }
 0x67f   : > { %4052 = vmatprep.subr.bf16.mxu0 %v4037_v16 }
 0x681   : > { %5013 = vmatmul.mubr.msk.bf16.gmra.mrb[12].mxu0 %vm345_vm5, %v5784_v15 }
 0x682   : > { %5351 = vmatprep.mubr.msk.bf16.mxu0 %vm345_vm5, %v5783_v12  ;;  %v4655_v12 = vpop.permute.xlu1 %4654 }
 0x689   : > { %5352 = vmatmul.mubr.msk.bf16.vlgmr.msra.gmra.mrb[16].mxu0 %vm345_vm5, %v5784_v15 }
 0x68a   : > { %4053 = vmatpush1.bf16.msra.mxu0 %v4036_v19  ;;  %4084 = vmatprep.mubr.bf16.mxu0 %v5857_v0 }
 0x68b   : > { %4054 = vmatprep.subr.bf16.mxu0 %v4039_v21 }
 0x68e   : > { %4055 = vmatpush1.bf16.msra.mxu0 %v4038_v22 }
 0x68f   : > { %5355 = vmatprep.subr.bf16.mxu0 %v4029_v1 }
 0x691   : > { %5022 = vmatmul.mubr.msk.bf16.vlgmr.msra.gmra.mrb[8].mxu0 %vm345_vm5, %v5785_v23 }
 0x692   : > { %5356 = vmatpush3.bf16.msra.mxu0 %v4029_v1  ;;  %4094 = vmatprep.mubr.bf16.mxu0 %v5857_v0 }
 0x693   : > { %5357 = vmatprep.subr.bf16.mxu0 %v4035_v18 }
 0x696   : > { %5358 = vmatpush3.bf16.msra.mxu0 %v4035_v18 }
 0x697   : > { %4209 = vmatprep.subr.bf16.mxu0 %v4194_v29 }
 0x699   : > { %5023 = vmatmul.mubr.msk.bf16.gmra.mrb[12].mxu0 %vm345_vm5, %v5786_v28 }
 0x69a   : > { %5359 = vmatprep.mubr.msk.bf16.mxu0 %vm345_vm5, %v5785_v23 }
 0x6a1   : > { %5360 = vmatmul.mubr.msk.bf16.vlgmr.msra.gmra.mrb[16].mxu0 %vm345_vm5, %v5786_v28 }
 0x6a2   : > { %4210 = vmatpush1.bf16.msra.mxu0 %v4193_v33  ;;  %4241 = vmatprep.mubr.bf16.mxu0 %v5857_v0 }
 0x6a3   : > { %4211 = vmatprep.subr.bf16.mxu0 %v4196_v35 }
 0x6a6   : > { %4212 = vmatpush1.bf16.msra.mxu0 %v4195_v36 }
 0x6a7   : > { %5363 = vmatprep.subr.bf16.mxu0 %v4186_v26 }
 0x6a9   : > { %5032 = vmatmul.mubr.msk.bf16.vlgmr.msra.gmra.mrb[8].mxu0 %vm345_vm5, %v5787_v37 }
 0x6aa   : > { %5364 = vmatpush3.bf16.msra.mxu0 %v4186_v26  ;;  %4251 = vmatprep.mubr.bf16.mxu0 %v5857_v0 }
 0x6ab   : > { %5365 = vmatprep.subr.bf16.mxu0 %v4192_v32 }
 0x6ae   : > { %5366 = vmatpush3.bf16.msra.mxu0 %v4192_v32 }
 0x6af   : > { %4366 = vmatprep.subr.bf16.mxu0 %v4351_v41 }
 0x6b1   : > { %5033 = vmatmul.mubr.msk.bf16.gmra.mrb[12].mxu0 %vm345_vm5, %v5788_v40 }
 0x6b2   : > { %5367 = vmatprep.mubr.msk.bf16.mxu0 %vm345_vm5, %v5787_v37 }
 0x6b9   : > { %5368 = vmatmul.mubr.msk.bf16.vlgmr.msra.gmra.mrb[16].mxu0 %vm345_vm5, %v5788_v40 }
 0x6ba   : > { %4367 = vmatpush1.bf16.msra.mxu0 %v4350_v45  ;;  %4398 = vmatprep.mubr.bf16.mxu0 %v5857_v0 }
 0x6bb   : > { %4368 = vmatprep.subr.bf16.mxu0 %v4353_v47 }
 0x6be   : > { %4369 = vmatpush1.bf16.msra.mxu0 %v4352_v48 }
 0x6bf   : > { %5371 = vmatprep.subr.bf16.mxu0 %v4343_v39 }
 0x6c1   : > { %5042 = vmatmul.mubr.msk.bf16.vlgmr.msra.gmra.mrb[8].mxu0 %vm345_vm5, %v5789_v49 }
 0x6c2   : > { %5372 = vmatpush3.bf16.msra.mxu0 %v4343_v39  ;;  %4408 = vmatprep.mubr.bf16.mxu0 %v5857_v0 }
 0x6c3   : > { %5373 = vmatprep.subr.bf16.mxu0 %v4349_v44 }
 0x6c6   : > { %5374 = vmatpush3.bf16.msra.mxu0 %v4349_v44 }
 0x6c7   : > { %4523 = vmatprep.subr.bf16.mxu0 %v4508_v53 }
 0x6c9   : > { %5043 = vmatmul.mubr.msk.bf16.gmra.mrb[12].mxu0 %vm345_vm5, %v5790_v52 }
 0x6ca   : > { %5375 = vmatprep.mubr.msk.bf16.mxu0 %vm345_vm5, %v5789_v49 }
 0x6d1   : > { %5376 = vmatmul.mubr.msk.bf16.vlgmr.msra.gmra.mrb[16].mxu0 %vm345_vm5, %v5790_v52 }
 0x6d2   : > { %4524 = vmatpush1.bf16.msra.mxu0 %v4507_v57  ;;  %4555 = vmatprep.mubr.bf16.mxu0 %v5857_v0 }
 0x6d3   : > { %4525 = vmatprep.subr.bf16.mxu0 %v4510_v59 }
 0x6d6   : > { %4526 = vmatpush1.bf16.msra.mxu0 %v4509_v60 }
 0x6d7   : > { %5379 = vmatprep.subr.bf16.mxu0 %v4500_v51 }
 0x6d9   : > { %5052 = vmatmul.mubr.msk.bf16.vlgmr.msra.gmra.mrb[8].mxu0 %vm345_vm5, %v5791_v61 }
 0x6da   : > { %5380 = vmatpush3.bf16.msra.mxu0 %v4500_v51  ;;  %4565 = vmatprep.mubr.bf16.mxu0 %v5857_v0  ;;  %v4650_v0 = vpop.permute.xlu0 %4649 }
 0x6db   : > { %5381 = vmatprep.subr.bf16.mxu0 %v4506_v56 }
 0x6de   : > { %5382 = vmatpush3.bf16.msra.mxu0 %v4506_v56  ;;  %v4660_v16 = vpop.permute.xlu0 %4659 }
 0x6e1   : > { %5053 = vmatmul.mubr.msk.bf16.gmra.mrb[12].mxu0 %vm345_vm5, %v5792_v62 }
 0x6e2   : > { %5383 = vmatprep.mubr.msk.bf16.mxu0 %vm345_vm5, %v5791_v61 }
 0x6e9   : > { %5384 = vmatmul.mubr.msk.bf16.vlgmr.msra.gmra.mrb[16].mxu0 %vm345_vm5, %v5792_v62 }
 0x7ac   : > { %v4557_v2 = vpop.f32.mrb[8].mxu0 }
 0x7ad   : > { %v4662_v3 = vadd.f32 %v4645_v63, %v4557_v2  ;;  %v4559_v24 = vpop.f32.mrb[9].mxu0 }
 0x7ae   : > { %v4663_v4 = vadd.f32 %v4645_v63, %v4559_v24  ;;  %v4561_v27 = vpop.f32.mrb[10].mxu0 }
 0x7af   : > { %v4674_v5 = vmax.f32 %v4662_v3, 0.0  ;;  %v4665_v6 = vadd.f32 %v4650_v0, %v4561_v27  ;;  %v4563_v7 = vpop.f32.mrb[11].mxu0 }
 0x7b0   : > { %v4675_v9 = vmax.f32 %v4663_v4, 0.0  ;;  %v4666_v10 = vadd.f32 %v4650_v0, %v4563_v7 }
 0x7b1   : > { %4686 = vst [vmem:[%s6898_s29] sm:$0xff] %v4674_v5  ;;  %v4677_v11 = vmax.f32 %v4665_v6, 0.0 }
 0x7b2   : > { %4687 = vst [vmem:[%s6898_s29 + $0x8] sm:$0xff] %v4675_v9  ;;  %v4678_v8 = vmax.f32 %v4666_v10, 0.0 }
 0x7b3   : > { %4689 = vst [vmem:[%s6898_s29 + $0x18] sm:$0xff] %v4677_v11 }
 0x7b4   : > { %4690 = vst [vmem:[%s6898_s29 + $0x20] sm:$0xff] %v4678_v8  ;;  %v4567_v13 = vpop.f32.mrb[12].mxu0 }
 0x7b5   : > { %v4668_v1 = vadd.f32 %v4655_v12, %v4567_v13  ;;  %v4569_v15 = vpop.f32.mrb[13].mxu0 }
 0x7b6   : > { %v4669_v17 = vadd.f32 %v4655_v12, %v4569_v15  ;;  %v4571_v14 = vpop.f32.mrb[14].mxu0 }
 0x7b7   : > { %v4680_v18 = vmax.f32 %v4668_v1, 0.0  ;;  %v4671_v19 = vadd.f32 %v4660_v16, %v4571_v14  ;;  %v4573_v20 = vpop.f32.mrb[15].mxu0 }
 0x7b8   : > { %v4681_v21 = vmax.f32 %v4669_v17, 0.0  ;;  %v4672_v22 = vadd.f32 %v4660_v16, %v4573_v20 }
 0x7b9   : > { %4692 = vst [vmem:[%s6898_s29 + $0x30] sm:$0xff] %v4680_v18  ;;  %v4683_v23 = vmax.f32 %v4671_v19, 0.0 }
 0x7ba   : > { %4693 = vst [vmem:[%s6898_s29 + $0x38] sm:$0xff] %v4681_v21  ;;  %v4684_v25 = vmax.f32 %v4672_v22, 0.0 }
 0x7bb   : > { %4695 = vst [vmem:[%s6898_s29 + $0x48] sm:$0xff] %v4683_v23 }
 0x7bc   : > { %4696 = vst [vmem:[%s6898_s29 + $0x50] sm:$0xff] %v4684_v25  ;;  %v5385_v26 = vpop.f32.mrb[16].mxu0 }
 0x7bd   : > { %v4670_v28 = vadd.f32 %v5385_v26, %v4655_v12  ;;  %v4610_v29 = vpop.f32.mrb[17].mxu0 }
 0x7be   : > { %v4664_v30 = vadd.f32 %v4645_v63, %v4610_v29  ;;  %v5386_v31 = vpop.f32.mrb[18].mxu0 }
 0x7bf   : > { %v4682_v32 = vmax.f32 %v4670_v28, 0.0  ;;  %v4673_v33 = vadd.f32 %v5386_v31, %v4660_v16  ;;  %v4613_v34 = vpop.f32.mrb[19].mxu0 }
 0x7c0   : > { %v4676_v35 = vmax.f32 %v4664_v30, 0.0  ;;  %v4667_v36 = vadd.f32 %v4650_v0, %v4613_v34 }
 0x7c1   : > { %4694 = vst.msk [vmem:[%s6898_s29 + $0x40] sm:$0xff] %vm345_vm5, %v4682_v32  ;;  %v4685_v37 = vmax.f32 %v4673_v33, 0.0 }
 0x7c2   : > { %4688 = vst.msk [vmem:[%s6898_s29 + $0x10] sm:$0xff] %vm345_vm5, %v4676_v35  ;;  %v4679_v38 = vmax.f32 %v4667_v36, 0.0 }
 0x7c3   : > { %4697 = vst.msk [vmem:[%s6898_s29 + $0x58] sm:$0xff] %vm345_vm5, %v4685_v37 }
 0x7c4   : > { %4691 = vst.msk [vmem:[%s6898_s29 + $0x28] sm:$0xff] %vm345_vm5, %v4679_v38 }
 0x7c5   : > { %5806 = shalt.err (!%p5803_p3)
}
 0x7c6   : > { %s5807_s11 = scalar_lea.hbm %s6915_s6, 1536  ;;  %s5811_s14 = scalar_lea.hbm %s6972_s4, 6144 }
 0x7c7   : > { %p5808_p4 = scmp.ne.s32.totalorder %s6915_s6, %s5807_s11  ;;  %p5812_p9 = scmp.lt.u32.totalorder %s6915_s6, %s6972_s4 }
 0x7c8   : > { %p5813_p10 = scmp.lt.u32.totalorder %s5811_s14, %s5807_s11  ;;  %p5815_p12 = scmp.lt.u32.totalorder %s5807_s11, %s6915_s6 }
 0x7c9   : > { %p5809_p7 = pnand %p5808_p4, %p5933_p5 }
 0x7ca   : > { %p5814_p11 = por %p5813_p10, %p5812_p9 }
 0x7cb   : > { %p5810_p8 = pneg %p5809_p7 }
 0x7cc   : > { %p5816_p13 = por %p5815_p12, %p5814_p11 }
 0x7ce   : > { %p5817_p0 = pnand %p5816_p13, %p5810_p8 }
 0x7d0   : > { %5820 = shalt.err (!%p5817_p0)
}
 0x7d1   : > { %s5868_s28 = smov 384   ;;  %s5869_s29 = smov 24  }
 0x7d2   : > { %5678 = dma.vmem_to_hbm [thread:$0]  (%p5933_p5), %s6919_s5, 1536, %s6915_s6, %s6927_s19, %s5868_s28, %s5868_s28, %s5869_s29  }
 0x7d3 PF: > { %p5684_p1 = scmp.ge.s32.totalorder %s5855_s18, 2  ;;  %s4727_s30 = sand.u32 1, %s5843_s15  }
 0x7d4   : > { %s4728_s20 = scalar_lea.sflag [#allocation4], %s4727_s30 }
 0x7d5   : > { %p5681_p2 = pnand %p5684_p1, %p5937_p6 }
 0x7d7   : > { %5838 = dma.done.wait (!%p5681_p2), %s4728_s20, 1536  }
 0x7d8   : > { %5840 = vsyncadd (!%p5681_p2), %s4728_s20, 4294965760  ;;  %p14_p3 = scmp.ge.s32.totalorder %s5920_s21, 6   ;;  %s6975_s15 = smov %s5847_s16 }
 0x7d9   : > { %s6976_s16 = smov %s5851_s17  ;;  %s6977_s17 = smov %s5931_s24 }
 0x7da   : > { %s6978_s18 = smov %s5920_s21  ;;  %16 = sbr.rel (!%p14_p3) target bundleno = 3 (0x3), region = 99 }
 0x7e1   :  { %4733 = vsyncpa [#allocation4], 1 }
 0x7e2   :  { %4735 = vsyncpa [#allocation4 + $0x1], 1 }

</bundles_post_ra>
